<compile_context>
chip_gen: v6e
topology: v6e:2x2x1
jax: 0.10.0
libtpu: 0.0.40
codegen_flags: <defaults>
</compile_context>

<pallas_src>
import functools

import jax
import jax.numpy as jnp
from jax.experimental import pallas as pl
from jax.experimental.pallas import tpu as pltpu


# --------------------------------------------------------------------------- #
# Kernel
# --------------------------------------------------------------------------- #
def _resnet_kernel(n_blocks, unroll,
                   x_ref, w1_ref, b1_ref,
                   wf_ref, bf_ref, ws_ref, bs_ref,
                   hss_ref, wh_ref, bh_ref,
                   o_ref):
    """One batch tile of the full forward: first Linear -> Blocks -> Head.

    All shapes are the lane-packed ones (P samples per row).  Block BatchNorms
    are already folded into (wf, bf); the head BatchNorm arrives as a
    precomputed (scale, shift) pair in hss_ref.
    """
    mxu_dtype = wf_ref.dtype  # MXU operand dtype (f32 or bf16); accumulation is f32.

    def row(ref, k):          # (1, d) row view of a stacked vector array
        return ref[pl.ds(k, 1), :]

    # first_layer
    x = x_ref[...].astype(mxu_dtype)
    h = jnp.dot(x, w1_ref[...], preferred_element_type=jnp.float32) + b1_ref[...]

    # residual Block: (BN folded) Linear -> ReLU -> Linear -> skip add.
    # TODO(synk): training-mode Dropout (pltpu.prng_*) not implemented; inference
    #             dropout is the identity, which matches module.eval().
    def block(k, h):
        z = jnp.dot(h.astype(mxu_dtype), wf_ref[k],
                    preferred_element_type=jnp.float32) + row(bf_ref, k)
        z = jnp.maximum(z, 0.0)                                  # ReLU
        z = jnp.dot(z.astype(mxu_dtype), ws_ref[k],
                    preferred_element_type=jnp.float32) + row(bs_ref, k)
        return h + z                                             # skip connection

    if unroll:
        for k in range(n_blocks):                # static unroll: full LLO visibility
            h = block(k, h)
    else:
        h = jax.lax.fori_loop(0, n_blocks, block, h, unroll=True)

    # head: Norm (precomputed scale/shift) -> ReLU -> Linear
    z = jnp.maximum(h * row(hss_ref, 0) + row(hss_ref, 1), 0.0)
    out = jnp.dot(z.astype(mxu_dtype), wh_ref[...],
                  preferred_element_type=jnp.float32) + bh_ref[...]
    o_ref[...] = out.astype(o_ref.dtype)   # P*d_out < 128 -> masked store; accepted.


# --------------------------------------------------------------------------- #
# Wrapper: BN folding, lane packing, parameter packing, pallas_call
# --------------------------------------------------------------------------- #
def _round_up(n, m):
    return ((n + m - 1) // m) * m


def _cdiv(a, b):
    return -(-a // b)


def _block_diag(w, p):
    """kron(I_p, w): block-diagonal replication of w (fan_in, fan_out)."""
    if p == 1:
        return w
    return jnp.kron(jnp.eye(p, dtype=w.dtype), w)


def _num_tensorcores():
    """Best-effort TensorCores-per-chip (v4/v5p megacore and v7x have 2)."""
    try:
        kind = jax.devices()[0].device_kind.lower()
    except Exception:
        return 1
    for tag in ("v7", "tpu7", "v4", "v5p"):
        if tag in kind:
            return 2
    return 1


def prepare_params(params, *, n_blocks, pack, eps=1e-5, weights_dtype=jnp.float32):
    """Fold BatchNorms, lane-pack (block-diag) and stack per-block params.

    Input `params` is the flat list produced by `init_params` (same layout as
    the PyTorch module).  Only matmul operands are cast to `weights_dtype`;
    biases and the head scale/shift stay f32 (used by the VPU on the f32 acc).
    """
    P = pack
    p = 0
    w1, b1 = params[p], params[p + 1]
    p += 2

    wf_l, bf_l, ws_l, bs_l = [], [], [], []
    for _ in range(n_blocks):
        g, be, m, v = params[p:p + 4]
        wf, bf, ws, bs = params[p + 4:p + 8]
        p += 8
        scale = g * jax.lax.rsqrt(v + eps)          # (1, d_main)
        shift = be - m * scale                      # (1, d_main)
        wf_fold = scale.reshape(-1, 1) * wf         # BN folded into linear_first
        bf_fold = (bf + shift @ wf).reshape(-1)
        wf_l.append(_block_diag(wf_fold, P))        # (P*d_main, P*d_hidden)
        bf_l.append(jnp.tile(bf_fold, P))           # (P*d_hidden,)
        ws_l.append(_block_diag(ws, P))             # (P*d_hidden, P*d_main)
        bs_l.append(jnp.tile(bs.reshape(-1), P))    # (P*d_main,)

    g, be, m, v = params[p:p + 4]
    wh, bh = params[p + 4], params[p + 5]
    h_scale = g * jax.lax.rsqrt(v + eps)            # (1, d_main)
    h_shift = be - m * h_scale                      # (1, d_main)
    head_ss = jnp.concatenate(
        [jnp.tile(h_scale, (1, P)), jnp.tile(h_shift, (1, P))], axis=0)  # (2, P*d_main)

    wd = weights_dtype
    return (
        _block_diag(w1, P).astype(wd),                        # (P*d_in, P*d_main)
        jnp.tile(b1, (1, P)).astype(jnp.float32),             # (1, P*d_main)
        jnp.stack(wf_l).astype(wd),                           # (n_blocks, P*d_main, P*d_hidden)
        jnp.stack(bf_l).astype(jnp.float32),                  # (n_blocks, P*d_hidden)
        jnp.stack(ws_l).astype(wd),                           # (n_blocks, P*d_hidden, P*d_main)
        jnp.stack(bs_l).astype(jnp.float32),                  # (n_blocks, P*d_main)
        head_ss.astype(jnp.float32),                          # (2, P*d_main)
        _block_diag(wh, P).astype(wd),                        # (P*d_main, P*d_out)
        jnp.tile(bh, (1, P)).astype(jnp.float32),             # (1, P*d_out)
    )


def resnet_forward(x, params, *, n_blocks, d_out, pack=None, max_tile_m=2048,
                   eps=1e-5, weights_dtype=jnp.float32,
                   unroll_blocks_threshold=16, num_tensorcores=None):
    assert n_blocks >= 1
    B, d_in = x.shape
    d_main = params[0].shape[1]
    d_hidden = params[6].shape[1]   # first block's linear_first weight

    # Lane-packing factor: pack P samples per row so P*d_main fills the 128 lanes.
    if pack is None:
        P = max(1, 128 // d_main) if d_main < 128 else 1
    else:
        P = pack
    P = max(1, min(P, B))

    packed = prepare_params(params, n_blocks=n_blocks, pack=P, eps=eps,
                            weights_dtype=weights_dtype)

    # Generation-aware grid: as few steps as possible on single-TC chips, a
    # multiple of the core count on megacore / v7x chips.
    ncores = num_tensorcores if num_tensorcores is not None else _num_tensorcores()
    Mp = _cdiv(B, P)                                   # packed rows of real data
    n_steps = max(ncores, _cdiv(Mp, max_tile_m))
    if ncores > 1 and n_steps % ncores:
        n_steps += ncores - (n_steps % ncores)
    tile_m = max(8, _round_up(_cdiv(Mp, n_steps), 8))
    Mp_pad = _round_up(Mp, tile_m)
    grid = Mp_pad // tile_m
    Bp = Mp_pad * P

    if Bp != B:
        x = jnp.pad(x, ((0, Bp - B), (0, 0)))
    xp = x.reshape(Mp_pad, P * d_in)                   # row-major: 4 samples / row

    kernel = functools.partial(_resnet_kernel, n_blocks,
                               n_blocks <= unroll_blocks_threshold)

    def param_spec(arr):
        nd = arr.ndim
        # Same full block every grid step (re-DMA is skipped by the pipeline).
        return pl.BlockSpec(arr.shape, lambda i, _nd=nd: (0,) * _nd)

    in_specs = [pl.BlockSpec((tile_m, P * d_in), lambda i: (i, 0))]
    in_specs += [param_spec(a) for a in packed]
    out_spec = pl.BlockSpec((tile_m, P * d_out), lambda i: (i, 0))

    flops = int(2 * B * (d_in * d_main
                         + n_blocks * 2 * d_main * d_hidden
                         + d_main * d_out))
    bytes_accessed = int(xp.size * xp.dtype.itemsize
                         + sum(int(a.size) * a.dtype.itemsize for a in packed)
                         + Mp_pad * P * d_out * 4)

    out = pl.pallas_call(
        kernel,
        out_shape=jax.ShapeDtypeStruct((Mp_pad, P * d_out), jnp.float32),
        grid_spec=pltpu.PrefetchScalarGridSpec(
            num_scalar_prefetch=0,
            grid=(grid,),
            in_specs=in_specs,
            out_specs=out_spec,
        ),
        compiler_params=pltpu.CompilerParams(
            dimension_semantics=("parallel",),
        ),
        cost_estimate=pl.CostEstimate(flops=flops, transcendentals=0,
                                      bytes_accessed=bytes_accessed),
    )(xp, *packed)

    return out.reshape(Bp, d_out)[:B]


# --------------------------------------------------------------------------- #
# Synthetic parameters (same shapes as the PyTorch module) + pure-JAX reference
# --------------------------------------------------------------------------- #
def init_params(key, *, d_in, d_main, d_hidden, n_blocks, d_out):
    params = []
    keys = iter(jax.random.split(key, 4 + 4 * n_blocks))

    def linear(k, fan_in, fan_out):
        bound = 1.0 / jnp.sqrt(fan_in)
        kw, kb = jax.random.split(k)
        w = jax.random.uniform(kw, (fan_in, fan_out), jnp.float32, -bound, bound)
        b = jax.random.uniform(kb, (1, fan_out), jnp.float32, -bound, bound)
        return w, b

    def batchnorm(k, d):
        kg, kb, km, kv = jax.random.split(k, 4)
        gamma = 1.0 + 0.1 * jax.random.normal(kg, (1, d), jnp.float32)
        beta = 0.1 * jax.random.normal(kb, (1, d), jnp.float32)
        mean = 0.1 * jax.random.normal(km, (1, d), jnp.float32)
        var = 1.0 + 0.1 * jax.random.uniform(kv, (1, d), jnp.float32)
        return gamma, beta, mean, var

    w1, b1 = linear(next(keys), d_in, d_main)
    params += [w1, b1]
    for _ in range(n_blocks):
        params += list(batchnorm(next(keys), d_main))
        wf, bf = linear(next(keys), d_main, d_hidden)
        ws, bs = linear(next(keys), d_hidden, d_main)
        params += [wf, bf, ws, bs]
    params += list(batchnorm(next(keys), d_main))
    wh, bh = linear(next(keys), d_main, d_out)
    params += [wh, bh]
    return params


def resnet_reference(x, params, *, n_blocks, eps=1e-5):
    """Literal (unfolded, unpacked) module math in pure JAX."""
    p = 0
    w1, b1 = params[p], params[p + 1]
    p += 2
    h = x.astype(jnp.float32) @ w1 + b1

    def bn(h, g, b, m, v):
        return (h - m) * jax.lax.rsqrt(v + eps) * g + b

    for _ in range(n_blocks):
        g, b, m, v = params[p:p + 4]
        wf, bf, ws, bs = params[p + 4:p + 8]
        p += 8
        z = bn(h, g, b, m, v)
        z = jnp.maximum(z @ wf + bf, 0.0)
        z = z @ ws + bs
        h = h + z

    g, b, m, v = params[p:p + 4]
    wh, bh = params[p + 4], params[p + 5]
    z = jnp.maximum(bn(h, g, b, m, v), 0.0)
    return z @ wh + bh


# --------------------------------------------------------------------------- #
if __name__ == "__main__":
    # Small tabular-ResNet shapes (d_main=32 -> pack factor 4 -> 128 lanes).
    B, d_in, d_main, d_hidden, n_blocks, d_out = 512, 8, 32, 64, 2, 4

    key = jax.random.PRNGKey(0)
    kx, kp = jax.random.split(key)
    x = jax.random.normal(kx, (B, d_in), jnp.float32)
    params = init_params(kp, d_in=d_in, d_main=d_main, d_hidden=d_hidden,
                         n_blocks=n_blocks, d_out=d_out)

    ref = resnet_reference(x, params, n_blocks=n_blocks)

    # 1) Default path: f32 MXU operands, auto pack factor, auto grid sizing.
    #    Tolerance covers BN-folding re-association + TPU default matmul precision.
    out = resnet_forward(x, params, n_blocks=n_blocks, d_out=d_out)
    out = jax.block_until_ready(out)
    assert out.shape == (B, d_out)
    assert jnp.allclose(out, ref, atol=2e-2, rtol=2e-2), "f32 kernel mismatch"

    # 2) Ragged batch + forced multi-step grid (exercises padding, the packed
    #    reshape on a non-multiple of pack*tile, and the multi-core step logic).
    B2 = 300
    x2 = x[:B2]
    ref2 = resnet_reference(x2, params, n_blocks=n_blocks)
    out2 = resnet_forward(x2, params, n_blocks=n_blocks, d_out=d_out,
                          max_tile_m=32, num_tensorcores=2)
    out2 = jax.block_until_ready(out2)
    assert out2.shape == (B2, d_out)
    assert jnp.allclose(out2, ref2, atol=2e-2, rtol=2e-2), "ragged-batch mismatch"

    # 3) bf16 MXU-operand path (sensible now that lane packing gives K=128/N=256);
    #    looser tolerance vs the f32 reference.
    out_bf16 = resnet_forward(x, params, n_blocks=n_blocks, d_out=d_out,
                              weights_dtype=jnp.bfloat16)
    out_bf16 = jax.block_until_ready(out_bf16)
    assert jnp.allclose(out_bf16, ref, atol=1e-1, rtol=1e-1), "bf16 kernel mismatch"

    print("KERNEL_OK")
</pallas_src>

<mosaic_0001>
module attributes {stable_mosaic.version = 11 : i64} {
  func.func @_resnet_kernel(%arg0: i32, %arg1: memref<128x32xf32, #tpu.memory_space<vmem>>, %arg2: memref<32x128xf32, #tpu.memory_space<vmem>>, %arg3: memref<1x128xf32, #tpu.memory_space<vmem>>, %arg4: memref<2x128x256xf32, #tpu.memory_space<vmem>>, %arg5: memref<2x256xf32, #tpu.memory_space<vmem>>, %arg6: memref<2x256x128xf32, #tpu.memory_space<vmem>>, %arg7: memref<2x128xf32, #tpu.memory_space<vmem>>, %arg8: memref<2x128xf32, #tpu.memory_space<vmem>>, %arg9: memref<128x16xf32, #tpu.memory_space<vmem>>, %arg10: memref<1x16xf32, #tpu.memory_space<vmem>>, %arg11: memref<128x16xf32, #tpu.memory_space<vmem>>) attributes {dimension_semantics = [#tpu.dimension_semantics<parallel>], iteration_bounds = array<i64: 1>, scalar_prefetch = 0 : i64, scratch_operands = 0 : i64, tpu.core_type = #tpu.core_type<tc>, window_params = [{transform_indices = @transform_0, window_bounds = array<i64: 128, 32>}, {pipeline_mode = #tpu.pipeline_mode<synchronous>, transform_indices = @transform_1, window_bounds = array<i64: 32, 128>}, {pipeline_mode = #tpu.pipeline_mode<synchronous>, transform_indices = @transform_2, window_bounds = array<i64: 1, 128>}, {pipeline_mode = #tpu.pipeline_mode<synchronous>, transform_indices = @transform_3, window_bounds = array<i64: 2, 128, 256>}, {pipeline_mode = #tpu.pipeline_mode<synchronous>, transform_indices = @transform_4, window_bounds = array<i64: 2, 256>}, {pipeline_mode = #tpu.pipeline_mode<synchronous>, transform_indices = @transform_5, window_bounds = array<i64: 2, 256, 128>}, {pipeline_mode = #tpu.pipeline_mode<synchronous>, transform_indices = @transform_6, window_bounds = array<i64: 2, 128>}, {pipeline_mode = #tpu.pipeline_mode<synchronous>, transform_indices = @transform_7, window_bounds = array<i64: 2, 128>}, {pipeline_mode = #tpu.pipeline_mode<synchronous>, transform_indices = @transform_8, window_bounds = array<i64: 128, 16>}, {pipeline_mode = #tpu.pipeline_mode<synchronous>, transform_indices = @transform_9, window_bounds = array<i64: 1, 16>}, {transform_indices = @transform_10, window_bounds = array<i64: 128, 16>}]} {
    %c0 = arith.constant 0 : index
    %c0_0 = arith.constant 0 : index
    %0 = vector.load %arg1[%c0, %c0_0] : memref<128x32xf32, #tpu.memory_space<vmem>>, vector<128x32xf32>
    %c0_1 = arith.constant 0 : index
    %c0_2 = arith.constant 0 : index
    %1 = vector.load %arg2[%c0_1, %c0_2] : memref<32x128xf32, #tpu.memory_space<vmem>>, vector<32x128xf32>
    %cst = arith.constant dense<0.000000e+00> : vector<128x128xf32>
    %2 = tpu.matmul %0, %1, %cst {dimension_numbers = #tpu.dot_dimension_numbers<[1], [0], [0], [1], [0, 0, 1, 1], [], []>} : vector<128x32xf32>, vector<32x128xf32>, vector<128x128xf32> -> vector<128x128xf32>
    %c0_3 = arith.constant 0 : index
    %c0_4 = arith.constant 0 : index
    %3 = vector.load %arg3[%c0_3, %c0_4] : memref<1x128xf32, #tpu.memory_space<vmem>>, vector<1x128xf32>
    %4 = vector.broadcast %3 : vector<1x128xf32> to vector<128x128xf32>
    %5 = arith.addf %2, %4 : vector<128x128xf32>
    %c0_5 = arith.constant 0 : index
    %c0_6 = arith.constant 0 : index
    %c0_7 = arith.constant 0 : index
    %6 = vector.load %arg4[%c0_5, %c0_6, %c0_7] : memref<2x128x256xf32, #tpu.memory_space<vmem>>, vector<1x128x256xf32>
    %7 = vector.shape_cast %6 : vector<1x128x256xf32> to vector<128x256xf32>
    %cst_8 = arith.constant dense<0.000000e+00> : vector<128x256xf32>
    %8 = tpu.matmul %5, %7, %cst_8 {dimension_numbers = #tpu.dot_dimension_numbers<[1], [0], [0], [1], [0, 0, 1, 1], [], []>} : vector<128x128xf32>, vector<128x256xf32>, vector<128x256xf32> -> vector<128x256xf32>
    %c0_9 = arith.constant 0 : index
    %c0_10 = arith.constant 0 : index
    %9 = vector.load %arg5[%c0_9, %c0_10] : memref<2x256xf32, #tpu.memory_space<vmem>>, vector<1x256xf32>
    %10 = vector.broadcast %9 : vector<1x256xf32> to vector<128x256xf32>
    %11 = arith.addf %8, %10 : vector<128x256xf32>
    %cst_11 = arith.constant 0.000000e+00 : f32
    %12 = vector.broadcast %cst_11 : f32 to vector<128x256xf32>
    %13 = arith.maximumf %11, %12 : vector<128x256xf32>
    %c0_12 = arith.constant 0 : index
    %c0_13 = arith.constant 0 : index
    %c0_14 = arith.constant 0 : index
    %14 = vector.load %arg6[%c0_12, %c0_13, %c0_14] : memref<2x256x128xf32, #tpu.memory_space<vmem>>, vector<1x256x128xf32>
    %15 = vector.shape_cast %14 : vector<1x256x128xf32> to vector<256x128xf32>
    %cst_15 = arith.constant dense<0.000000e+00> : vector<128x128xf32>
    %16 = tpu.matmul %13, %15, %cst_15 {dimension_numbers = #tpu.dot_dimension_numbers<[1], [0], [0], [1], [0, 0, 1, 1], [], []>} : vector<128x256xf32>, vector<256x128xf32>, vector<128x128xf32> -> vector<128x128xf32>
    %c0_16 = arith.constant 0 : index
    %c0_17 = arith.constant 0 : index
    %17 = vector.load %arg7[%c0_16, %c0_17] : memref<2x128xf32, #tpu.memory_space<vmem>>, vector<1x128xf32>
    %18 = vector.broadcast %17 : vector<1x128xf32> to vector<128x128xf32>
    %19 = arith.addf %16, %18 : vector<128x128xf32>
    %20 = arith.addf %5, %19 : vector<128x128xf32>
    %c1 = arith.constant 1 : index
    %c0_18 = arith.constant 0 : index
    %c0_19 = arith.constant 0 : index
    %21 = vector.load %arg4[%c1, %c0_18, %c0_19] : memref<2x128x256xf32, #tpu.memory_space<vmem>>, vector<1x128x256xf32>
    %22 = vector.shape_cast %21 : vector<1x128x256xf32> to vector<128x256xf32>
    %cst_20 = arith.constant dense<0.000000e+00> : vector<128x256xf32>
    %23 = tpu.matmul %20, %22, %cst_20 {dimension_numbers = #tpu.dot_dimension_numbers<[1], [0], [0], [1], [0, 0, 1, 1], [], []>} : vector<128x128xf32>, vector<128x256xf32>, vector<128x256xf32> -> vector<128x256xf32>
    %c1_21 = arith.constant 1 : index
    %c0_22 = arith.constant 0 : index
    %24 = vector.load %arg5[%c1_21, %c0_22] : memref<2x256xf32, #tpu.memory_space<vmem>>, vector<1x256xf32>
    %25 = vector.broadcast %24 : vector<1x256xf32> to vector<128x256xf32>
    %26 = arith.addf %23, %25 : vector<128x256xf32>
    %cst_23 = arith.constant 0.000000e+00 : f32
    %27 = vector.broadcast %cst_23 : f32 to vector<128x256xf32>
    %28 = arith.maximumf %26, %27 : vector<128x256xf32>
    %c1_24 = arith.constant 1 : index
    %c0_25 = arith.constant 0 : index
    %c0_26 = arith.constant 0 : index
    %29 = vector.load %arg6[%c1_24, %c0_25, %c0_26] : memref<2x256x128xf32, #tpu.memory_space<vmem>>, vector<1x256x128xf32>
    %30 = vector.shape_cast %29 : vector<1x256x128xf32> to vector<256x128xf32>
    %cst_27 = arith.constant dense<0.000000e+00> : vector<128x128xf32>
    %31 = tpu.matmul %28, %30, %cst_27 {dimension_numbers = #tpu.dot_dimension_numbers<[1], [0], [0], [1], [0, 0, 1, 1], [], []>} : vector<128x256xf32>, vector<256x128xf32>, vector<128x128xf32> -> vector<128x128xf32>
    %c1_28 = arith.constant 1 : index
    %c0_29 = arith.constant 0 : index
    %32 = vector.load %arg7[%c1_28, %c0_29] : memref<2x128xf32, #tpu.memory_space<vmem>>, vector<1x128xf32>
    %33 = vector.broadcast %32 : vector<1x128xf32> to vector<128x128xf32>
    %34 = arith.addf %31, %33 : vector<128x128xf32>
    %35 = arith.addf %20, %34 : vector<128x128xf32>
    %c0_30 = arith.constant 0 : index
    %c0_31 = arith.constant 0 : index
    %36 = vector.load %arg8[%c0_30, %c0_31] : memref<2x128xf32, #tpu.memory_space<vmem>>, vector<1x128xf32>
    %37 = vector.broadcast %36 : vector<1x128xf32> to vector<128x128xf32>
    %38 = arith.mulf %35, %37 : vector<128x128xf32>
    %c1_32 = arith.constant 1 : index
    %c0_33 = arith.constant 0 : index
    %39 = vector.load %arg8[%c1_32, %c0_33] : memref<2x128xf32, #tpu.memory_space<vmem>>, vector<1x128xf32>
    %40 = vector.broadcast %39 : vector<1x128xf32> to vector<128x128xf32>
    %41 = arith.addf %38, %40 : vector<128x128xf32>
    %cst_34 = arith.constant 0.000000e+00 : f32
    %42 = vector.broadcast %cst_34 : f32 to vector<128x128xf32>
    %43 = arith.maximumf %41, %42 : vector<128x128xf32>
    %c0_35 = arith.constant 0 : index
    %c0_36 = arith.constant 0 : index
    %44 = vector.load %arg9[%c0_35, %c0_36] : memref<128x16xf32, #tpu.memory_space<vmem>>, vector<128x16xf32>
    %cst_37 = arith.constant dense<0.000000e+00> : vector<128x16xf32>
    %45 = tpu.matmul %43, %44, %cst_37 {dimension_numbers = #tpu.dot_dimension_numbers<[1], [0], [0], [1], [0, 0, 1, 1], [], []>} : vector<128x128xf32>, vector<128x16xf32>, vector<128x16xf32> -> vector<128x16xf32>
    %c0_38 = arith.constant 0 : index
    %c0_39 = arith.constant 0 : index
    %46 = vector.load %arg10[%c0_38, %c0_39] : memref<1x16xf32, #tpu.memory_space<vmem>>, vector<1x16xf32>
    %47 = vector.broadcast %46 : vector<1x16xf32> to vector<128x16xf32>
    %48 = arith.addf %45, %47 : vector<128x16xf32>
    %c0_40 = arith.constant 0 : index
    %c0_41 = arith.constant 0 : index
    %49 = vector.load %arg11[%c0_40, %c0_41] : memref<128x16xf32, #tpu.memory_space<vmem>>, vector<128x16xf32>
    tpu.vector_store %arg11[%c0_40, %c0_41], %48 {strides = array<i32>} : memref<128x16xf32, #tpu.memory_space<vmem>>, vector<128x16xf32>,
    return
  }
  func.func @transform_0(%arg0: i32) -> (i32, i32) {
    %c0_i32 = arith.constant 0 : i32
    %c0_i32_0 = arith.constant 0 : i32
    return %arg0, %c0_i32 : i32, i32
  }
  func.func @transform_1(%arg0: i32) -> (i32, i32) {
    %c0_i32 = arith.constant 0 : i32
    %c0_i32_0 = arith.constant 0 : i32
    %c0_i32_1 = arith.constant 0 : i32
    return %c0_i32, %c0_i32_0 : i32, i32
  }
  func.func @transform_2(%arg0: i32) -> (i32, i32) {
    %c0_i32 = arith.constant 0 : i32
    %c0_i32_0 = arith.constant 0 : i32
    %c0_i32_1 = arith.constant 0 : i32
    return %c0_i32, %c0_i32_0 : i32, i32
  }
  func.func @transform_3(%arg0: i32) -> (i32, i32, i32) {
    %c0_i32 = arith.constant 0 : i32
    %c0_i32_0 = arith.constant 0 : i32
    %c0_i32_1 = arith.constant 0 : i32
    %c0_i32_2 = arith.constant 0 : i32
    return %c0_i32, %c0_i32_0, %c0_i32_1 : i32, i32, i32
  }
  func.func @transform_4(%arg0: i32) -> (i32, i32) {
    %c0_i32 = arith.constant 0 : i32
    %c0_i32_0 = arith.constant 0 : i32
    %c0_i32_1 = arith.constant 0 : i32
    return %c0_i32, %c0_i32_0 : i32, i32
  }
  func.func @transform_5(%arg0: i32) -> (i32, i32, i32) {
    %c0_i32 = arith.constant 0 : i32
    %c0_i32_0 = arith.constant 0 : i32
    %c0_i32_1 = arith.constant 0 : i32
    %c0_i32_2 = arith.constant 0 : i32
    return %c0_i32, %c0_i32_0, %c0_i32_1 : i32, i32, i32
  }
  func.func @transform_6(%arg0: i32) -> (i32, i32) {
    %c0_i32 = arith.constant 0 : i32
    %c0_i32_0 = arith.constant 0 : i32
    %c0_i32_1 = arith.constant 0 : i32
    return %c0_i32, %c0_i32_0 : i32, i32
  }
  func.func @transform_7(%arg0: i32) -> (i32, i32) {
    %c0_i32 = arith.constant 0 : i32
    %c0_i32_0 = arith.constant 0 : i32
    %c0_i32_1 = arith.constant 0 : i32
    return %c0_i32, %c0_i32_0 : i32, i32
  }
  func.func @transform_8(%arg0: i32) -> (i32, i32) {
    %c0_i32 = arith.constant 0 : i32
    %c0_i32_0 = arith.constant 0 : i32
    %c0_i32_1 = arith.constant 0 : i32
    return %c0_i32, %c0_i32_0 : i32, i32
  }
  func.func @transform_9(%arg0: i32) -> (i32, i32) {
    %c0_i32 = arith.constant 0 : i32
    %c0_i32_0 = arith.constant 0 : i32
    %c0_i32_1 = arith.constant 0 : i32
    return %c0_i32, %c0_i32_0 : i32, i32
  }
  func.func @transform_10(%arg0: i32) -> (i32, i32) {
    %c0_i32 = arith.constant 0 : i32
    %c0_i32_0 = arith.constant 0 : i32
    return %arg0, %c0_i32 : i32, i32
  }
}

</mosaic_0001>

<bundles_post_ra>
// kernel: tpu_custom_call.1
= control target key start
LH: loop header
LB: loop body
LE: loop exit
PB: predicated region body
PF: predicated region fallthrough
CT: control target
= control target key end

     0   :  { %15 = vsyncpa [#allocation3], 0  ;;  %s2408_s0 = inlined_call_operand.vmem [shape: f32[128,32], index: 0, kind: input, shape index: {}]   ;;  %s2409_s1 = inlined_call_operand.vmem [shape: f32[32,128], index: 1, kind: input, shape index: {}]   ;;  %s2410_s2 = inlined_call_operand.vmem [shape: f32[1,128], index: 2, kind: input, shape index: {}]   ;;  %s2411_s3 = inlined_call_operand.hbm [shape: f32[2,128,256], index: 3, kind: input, shape index: {}]   ;;  %s2412_s4 = inlined_call_operand.vmem [shape: f32[2,256], index: 4, kind: input, shape index: {}]   ;;  %s2413_s5 = inlined_call_operand.hbm [shape: f32[2,256,128], index: 5, kind: input, shape index: {}]   ;;  %s2414_s6 = inlined_call_operand.vmem [shape: f32[2,128], index: 6, kind: input, shape index: {}]   ;;  %s2415_s7 = inlined_call_operand.vmem [shape: f32[2,128], index: 7, kind: input, shape index: {}]   ;;  %s2416_s8 = inlined_call_operand.vmem [shape: f32[128,16], index: 8, kind: input, shape index: {}]   ;;  %s2417_s9 = inlined_call_operand.vmem [shape: f32[1,16], index: 9, kind: input, shape index: {}]   ;;  %s2418_s10 = inlined_call_operand.vmem [shape: f32[128,16], index: 10, kind: output, shape index: {}]  }
   0x1   :  { %16 = vsyncpa [#allocation5], 0  ;;  %s1812_s13 = smov [#allocation2]  }
   0x2   :  { %s28_s14 = sshll.u32 %s1812_s13, 4  ;;  %s29_s14 = int_to_ptr.vmem [resolvable:$true] %s28_s14 }
   0x3   :  { %s1776_s15 = scalar_lea.vmem %s29_s14, 8192  ;;  %p1781_p1 = scmp.lt.s32.totalorder %s29_s14, %s29_s14 }
   0x4   :  { %p1777_p0 = scmp.ne.s32.totalorder %s29_s14, %s1776_s15  ;;  %p1782_p2 = scmp.lt.s32.totalorder %s1776_s15, %s1776_s15 }
   0x6   :  { %p1783_p3 = por %p1782_p2, %p1781_p1 }
   0x8   :  { %p1784_p4 = pnand %p1783_p3, %p1777_p0 }
   0xa   :  { %1787 = shalt.err (!%p1784_p4)
}
   0xb   :  { %s1813_s16 = smov 256   ;;  %s1814_s17 = smov 16  }
   0xc   :  { %34 = dma.hbm_to_vmem [thread:$0]  %s2411_s3, 8192, %s29_s14, [#allocation3], %s1813_s16, %s1813_s16, %s1814_s17  }
   0xd   :  { %s1815_s20 = smov [#allocation4]  }
   0xe   :  { %s42_s21 = sshll.u32 %s1815_s20, 4  ;;  %s43_s21 = int_to_ptr.vmem [resolvable:$true] %s42_s21 }
   0xf   :  { %s1796_s22 = scalar_lea.vmem %s43_s21, 8192  ;;  %p1801_p6 = scmp.lt.s32.totalorder %s43_s21, %s43_s21 }
  0x10   :  { %p1797_p5 = scmp.ne.s32.totalorder %s43_s21, %s1796_s22  ;;  %p1802_p7 = scmp.lt.s32.totalorder %s1796_s22, %s1796_s22 }
  0x12   :  { %p1803_p8 = por %p1802_p7, %p1801_p6 }
  0x14   :  { %p1804_p9 = pnand %p1803_p8, %p1797_p5 }
  0x16   :  { %1807 = shalt.err (!%p1804_p9)
}
  0x17   :  { %s1816_s23 = smov 128   ;;  %s1817_s24 = smov 8  }
  0x18   :  { %48 = dma.hbm_to_vmem [thread:$0]  %s2413_s5, 8192, %s43_s21, [#allocation5], %s1816_s23, %s1816_s23, %s1817_s24  }
  0x19   :  { %1808 = dma.done.wait [#allocation3], 8192  }
  0x1a   :  { %1809 = vsyncadd [#allocation3], 4294959104 }
  0x1b   :  { %1810 = dma.done.wait [#allocation5], 8192  }
  0x1c   :  { %1811 = vsyncadd [#allocation5], 4294959104  ;;  %vm90_vm0 = vcmask 261120   ;;  %v82_v0 = vld [vmem:[%s2409_s1 + $0x18] sm:$0xff]  ;;  %v81_v1 = vld [vmem:[%s2409_s1 + $0x10] sm:$0xff]  ;;  %v1818_v52 = vmov 0.0  }
  0x1d   :  { %1641 = vmatprep.subr.mxu0 %v82_v0  ;;  %v63_v2 = vld [vmem:[%s2408_s0] sm:$0xff]  ;;  %v80_v3 = vld [vmem:[%s2409_s1 + $0x8] sm:$0xff]  ;;  %v65_v6 = vld [vmem:[%s2408_s0 + $0x10] sm:$0xff]  ;;  %392 = vmatprep.mubr.f32.mxu1 %v1818_v52  ;;  %vm1383_vm1 = vcmask 130048  }
  0x1e   :  { %1642 = vmatpush3.msra.mxu0 %v82_v0  ;;  %1649 = vmatprep.mubr.msk.f32.mxu0 %vm90_vm0, %v63_v2  ;;  %v79_v4 = vld [vmem:[%s2409_s1] sm:$0xff]  ;;  %v64_v5 = vld [vmem:[%s2408_s0 + $0x8] sm:$0xff]  ;;  %v315_v7 = vld [vmem:[#allocation2 + $0xf8] sm:$0xff] }
  0x1f   :  { %1643 = vmatprep.subr.mxu0 %v81_v1  ;;  %328 = vmatprep.subr.mxu1 %v315_v7  ;;  %v314_v8 = vld [vmem:[#allocation2 + $0xf0] sm:$0xff]  ;;  %v313_v9 = vld [vmem:[#allocation2 + $0xe8] sm:$0xff]  ;;  %v312_v10 = vld [vmem:[#allocation2 + $0xe0] sm:$0xff] }
  0x20   :  { %1644 = vmatpush3.msra.mxu0 %v81_v1  ;;  %329 = vmatpush1.msra.mxu1 %v314_v8  ;;  %v311_v11 = vld [vmem:[#allocation2 + $0xd8] sm:$0xff]  ;;  %v310_v12 = vld [vmem:[#allocation2 + $0xd0] sm:$0xff]  ;;  %v309_v14 = vld [vmem:[#allocation2 + $0xc8] sm:$0xff] }
  0x21   :  { %1645 = vmatprep.subr.mxu0 %v80_v3  ;;  %330 = vmatprep.subr.mxu1 %v313_v9  ;;  %v66_v13 = vld [vmem:[%s2408_s0 + $0x18] sm:$0xff]  ;;  %v67_v15 = vld [vmem:[%s2408_s0 + $0x20] sm:$0xff]  ;;  %v306_v18 = vld [vmem:[#allocation2 + $0xb0] sm:$0xff] }
  0x22   :  { %1646 = vmatpush3.msra.mxu0 %v80_v3  ;;  %331 = vmatpush1.msra.mxu1 %v312_v10  ;;  %v308_v16 = vld [vmem:[#allocation2 + $0xc0] sm:$0xff]  ;;  %v307_v17 = vld [vmem:[#allocation2 + $0xb8] sm:$0xff]  ;;  %v68_v19 = vld [vmem:[%s2408_s0 + $0x28] sm:$0xff] }
  0x23   :  { %1647 = vmatprep.subr.mxu0 %v79_v4  ;;  %332 = vmatprep.subr.mxu1 %v311_v11  ;;  %v305_v20 = vld [vmem:[#allocation2 + $0xa8] sm:$0xff]  ;;  %v69_v21 = vld [vmem:[%s2408_s0 + $0x30] sm:$0xff]  ;;  %v304_v22 = vld [vmem:[#allocation2 + $0xa0] sm:$0xff] }
  0x24   :  { %1648 = vmatpush3.msra.mxu0 %v79_v4  ;;  %333 = vmatpush1.msra.mxu1 %v310_v12  ;;  %v303_v23 = vld [vmem:[#allocation2 + $0x98] sm:$0xff]  ;;  %v302_v24 = vld [vmem:[#allocation2 + $0x90] sm:$0xff]  ;;  %v301_v26 = vld [vmem:[#allocation2 + $0x88] sm:$0xff] }
  0x25   :  { %1650 = vmatmul.mubr.msk.f32.vlgmr.msra.gmra.mxu0 %vm90_vm0, %v64_v5  ;;  %334 = vmatprep.subr.mxu1 %v309_v14  ;;  %v70_v25 = vld [vmem:[%s2408_s0 + $0x38] sm:$0xff]  ;;  %v71_v27 = vld [vmem:[%s2408_s0 + $0x40] sm:$0xff]  ;;  %v298_v30 = vld [vmem:[#allocation2 + $0x70] sm:$0xff] }
  0x26   :  { %1652 = vmatprep.mubr.msk.f32.mxu0 %vm90_vm0, %v65_v6  ;;  %335 = vmatpush1.msra.mxu1 %v308_v16  ;;  %v300_v28 = vld [vmem:[#allocation2 + $0x80] sm:$0xff]  ;;  %v299_v29 = vld [vmem:[#allocation2 + $0x78] sm:$0xff]  ;;  %v72_v31 = vld [vmem:[%s2408_s0 + $0x48] sm:$0xff] }
  0x27   :  { %336 = vmatprep.subr.mxu1 %v307_v17  ;;  %v297_v32 = vld [vmem:[#allocation2 + $0x68] sm:$0xff]  ;;  %v73_v33 = vld [vmem:[%s2408_s0 + $0x50] sm:$0xff]  ;;  %v296_v34 = vld [vmem:[#allocation2 + $0x60] sm:$0xff] }
  0x28   :  { %337 = vmatpush1.msra.mxu1 %v306_v18  ;;  %v295_v35 = vld [vmem:[#allocation2 + $0x58] sm:$0xff]  ;;  %v294_v36 = vld [vmem:[#allocation2 + $0x50] sm:$0xff]  ;;  %v293_v38 = vld [vmem:[#allocation2 + $0x48] sm:$0xff] }
  0x29   :  { %1653 = vmatmul.mubr.msk.f32.gmra.mxu0 %vm90_vm0, %v66_v13  ;;  %338 = vmatprep.subr.mxu1 %v305_v20  ;;  %v74_v37 = vld [vmem:[%s2408_s0 + $0x58] sm:$0xff]  ;;  %v75_v39 = vld [vmem:[%s2408_s0 + $0x60] sm:$0xff]  ;;  %v290_v42 = vld [vmem:[#allocation2 + $0x30] sm:$0xff] }
  0x2a   :  { %1655 = vmatprep.mubr.msk.f32.mxu0 %vm90_vm0, %v67_v15  ;;  %339 = vmatpush1.msra.mxu1 %v304_v22  ;;  %v292_v40 = vld [vmem:[#allocation2 + $0x40] sm:$0xff]  ;;  %v291_v41 = vld [vmem:[#allocation2 + $0x38] sm:$0xff]  ;;  %v76_v43 = vld [vmem:[%s2408_s0 + $0x68] sm:$0xff] }
  0x2b   :  { %340 = vmatprep.subr.mxu1 %v303_v23  ;;  %v289_v44 = vld [vmem:[#allocation2 + $0x28] sm:$0xff]  ;;  %v77_v45 = vld [vmem:[%s2408_s0 + $0x70] sm:$0xff]  ;;  %v78_v46 = vld [vmem:[%s2408_s0 + $0x78] sm:$0xff] }
  0x2c   :  { %341 = vmatpush1.msra.mxu1 %v302_v24  ;;  %v288_v47 = vld [vmem:[#allocation2 + $0x20] sm:$0xff]  ;;  %v287_v48 = vld [vmem:[#allocation2 + $0x18] sm:$0xff]  ;;  %v286_v49 = vld [vmem:[#allocation2 + $0x10] sm:$0xff] }
  0x2d   :  { %1656 = vmatmul.mubr.msk.f32.gmra.mxu0 %vm90_vm0, %v68_v19  ;;  %342 = vmatprep.subr.mxu1 %v301_v26  ;;  %v285_v50 = vld [vmem:[#allocation2 + $0x8] sm:$0xff]  ;;  %v284_v51 = vld [vmem:[#allocation2] sm:$0xff]  ;;  %v552_v53 = vld [vmem:[#allocation4 + $0xf8] sm:$0xff] }
  0x2e   :  { %1658 = vmatprep.mubr.msk.f32.mxu0 %vm90_vm0, %v69_v21  ;;  %343 = vmatpush1.msra.mxu1 %v300_v28  ;;  %v536_v54 = vld [vmem:[#allocation4 + $0x78] sm:$0xff]  ;;  %v551_v55 = vld [vmem:[#allocation4 + $0xf0] sm:$0xff]  ;;  %v550_v57 = vld [vmem:[#allocation4 + $0xe8] sm:$0xff] }
  0x2f   :  { %344 = vmatprep.subr.mxu1 %v299_v29  ;;  %1449 = vmatprep.subr.mxu0 %v552_v53  ;;  %v535_v56 = vld [vmem:[#allocation4 + $0x70] sm:$0xff]  ;;  %v534_v58 = vld [vmem:[#allocation4 + $0x68] sm:$0xff]  ;;  %v549_v59 = vld [vmem:[#allocation4 + $0xe0] sm:$0xff] }
  0x30   :  { %345 = vmatpush1.msra.mxu1 %v298_v30  ;;  %1450 = vmatpush3.msra.mxu0 %v536_v54  ;;  %v533_v60 = vld [vmem:[#allocation4 + $0x60] sm:$0xff]  ;;  %v548_v61 = vld [vmem:[#allocation4 + $0xd8] sm:$0xff]  ;;  %v547_v63 = vld [vmem:[#allocation4 + $0xd0] sm:$0xff] }
  0x31   :  { %1659 = vmatmul.mubr.msk.f32.gmra.mxu0 %vm90_vm0, %v70_v25  ;;  %346 = vmatprep.subr.mxu1 %v297_v32  ;;  %v532_v62 = vld [vmem:[#allocation4 + $0x58] sm:$0xff]  ;;  %v531_v0 = vld [vmem:[#allocation4 + $0x50] sm:$0xff]  ;;  %v546_v1 = vld [vmem:[#allocation4 + $0xc8] sm:$0xff] }
  0x32   :  { %1661 = vmatprep.mubr.msk.f32.mxu0 %vm90_vm0, %v71_v27  ;;  %347 = vmatpush1.msra.mxu1 %v296_v34  ;;  %v530_v2 = vld [vmem:[#allocation4 + $0x48] sm:$0xff]  ;;  %v545_v3 = vld [vmem:[#allocation4 + $0xc0] sm:$0xff]  ;;  %v544_v5 = vld [vmem:[#allocation4 + $0xb8] sm:$0xff] }
  0x33   :  { %348 = vmatprep.subr.mxu1 %v295_v35  ;;  %1451 = vmatprep.subr.mxu0 %v551_v55  ;;  %v529_v4 = vld [vmem:[#allocation4 + $0x40] sm:$0xff]  ;;  %v528_v6 = vld [vmem:[#allocation4 + $0x38] sm:$0xff]  ;;  %v543_v7 = vld [vmem:[#allocation4 + $0xb0] sm:$0xff] }
  0x34   :  { %349 = vmatpush1.msra.mxu1 %v294_v36  ;;  %1452 = vmatpush3.msra.mxu0 %v535_v56  ;;  %v527_v8 = vld [vmem:[#allocation4 + $0x30] sm:$0xff]  ;;  %v542_v9 = vld [vmem:[#allocation4 + $0xa8] sm:$0xff]  ;;  %v541_v11 = vld [vmem:[#allocation4 + $0xa0] sm:$0xff] }
  0x35   :  { %1662 = vmatmul.mubr.msk.f32.gmra.mxu0 %vm90_vm0, %v72_v31  ;;  %350 = vmatprep.subr.mxu1 %v293_v38  ;;  %v526_v10 = vld [vmem:[#allocation4 + $0x28] sm:$0xff]  ;;  %v525_v12 = vld [vmem:[#allocation4 + $0x20] sm:$0xff]  ;;  %v540_v13 = vld [vmem:[#allocation4 + $0x98] sm:$0xff] }
  0x36   :  { %1664 = vmatprep.mubr.msk.f32.mxu0 %vm90_vm0, %v73_v33  ;;  %351 = vmatpush1.msra.mxu1 %v292_v40  ;;  %v1406_v15 = vld [vmem:[%s2410_s2] ss:$0 sm:$0xff]  ;;  %v751_v55 = vld [vmem:[#allocation2 + $0x1f8] sm:$0xff]  ;;  %v750_v56 = vld [vmem:[#allocation2 + $0x1f0] sm:$0xff] }
  0x37   :  { %352 = vmatprep.subr.mxu1 %v291_v41  ;;  %1453 = vmatprep.subr.mxu0 %v550_v57  ;;  %v537_v53 = vld [vmem:[#allocation4 + $0x80] sm:$0xff]  ;;  %v749_v57 = vld [vmem:[#allocation2 + $0x1e8] sm:$0xff] }
  0x38   :  { %353 = vmatpush1.msra.mxu1 %v290_v42  ;;  %1454 = vmatpush3.msra.mxu0 %v534_v58  ;;  %v521_v54 = vld [vmem:[#allocation4] sm:$0xff] }
  0x39   :  { %1665 = vmatmul.mubr.msk.f32.gmra.mxu0 %vm90_vm0, %v74_v37  ;;  %354 = vmatprep.subr.mxu1 %v289_v44  ;;  %v748_v58 = vld [vmem:[#allocation2 + $0x1e0] sm:$0xff] }
  0x3a   :  { %1667 = vmatprep.mubr.msk.f32.mxu0 %vm90_vm0, %v75_v39  ;;  %355 = vmatpush1.msra.mxu1 %v288_v47  ;;  %v524_v47 = vld [vmem:[#allocation4 + $0x18] sm:$0xff] }
  0x3b   :  { %356 = vmatprep.subr.mxu1 %v287_v48  ;;  %1455 = vmatprep.subr.mxu0 %v549_v59  ;;  %v539_v48 = vld [vmem:[#allocation4 + $0x90] sm:$0xff]  ;;  %v747_v59 = vld [vmem:[#allocation2 + $0x1d8] sm:$0xff] }
  0x3c   :  { %357 = vmatpush1.msra.mxu1 %v286_v49  ;;  %1456 = vmatpush3.msra.mxu0 %v533_v60  ;;  %v523_v49 = vld [vmem:[#allocation4 + $0x10] sm:$0xff] }
  0x3d   :  { %1668 = vmatmul.mubr.msk.f32.gmra.mxu0 %vm90_vm0, %v76_v43  ;;  %358 = vmatprep.subr.mxu1 %v285_v50  ;;  %v538_v50 = vld [vmem:[#allocation4 + $0x88] sm:$0xff]  ;;  %v746_v60 = vld [vmem:[#allocation2 + $0x1d0] sm:$0xff] }
  0x3e   :  { %1670 = vmatprep.mubr.msk.f32.mxu0 %vm90_vm0, %v77_v45  ;;  %359 = vmatpush1.msra.mxu1 %v284_v51  ;;  %v522_v51 = vld [vmem:[#allocation4 + $0x8] sm:$0xff] }
  0x3f   :  { %1457 = vmatprep.subr.mxu0 %v548_v61  ;;  %765 = vmatprep.subr.mxu1 %v751_v55  ;;  %v745_v61 = vld [vmem:[#allocation2 + $0x1c8] sm:$0xff] }
  0x40   :  { %1458 = vmatpush3.msra.mxu0 %v532_v62  ;;  %v744_v62 = vld [vmem:[#allocation2 + $0x1c0] sm:$0xff] }
  0x41   :  { %1671 = vmatmul.mubr.msk.f32.gmra.mxu0 %vm90_vm0, %v78_v46  ;;  %1459 = vmatprep.subr.mxu0 %v547_v63  ;;  %v743_v63 = vld [vmem:[#allocation2 + $0x1b8] sm:$0xff] }
  0x42   :  { %1460 = vmatpush3.msra.mxu0 %v531_v0  ;;  %v742_v0 = vld [vmem:[#allocation2 + $0x1b0] sm:$0xff] }
  0x43   :  { %1461 = vmatprep.subr.mxu0 %v546_v1  ;;  %v741_v1 = vld [vmem:[#allocation2 + $0x1a8] sm:$0xff] }
  0x44   :  { %1462 = vmatpush3.msra.mxu0 %v530_v2  ;;  %v740_v2 = vld [vmem:[#allocation2 + $0x1a0] sm:$0xff] }
  0x45   :  { %1463 = vmatprep.subr.mxu0 %v545_v3  ;;  %v739_v3 = vld [vmem:[#allocation2 + $0x198] sm:$0xff] }
  0x46   :  { %1464 = vmatpush3.msra.mxu0 %v529_v4  ;;  %v738_v4 = vld [vmem:[#allocation2 + $0x190] sm:$0xff] }
  0x47   :  { %1465 = vmatprep.subr.mxu0 %v544_v5  ;;  %v737_v5 = vld [vmem:[#allocation2 + $0x188] sm:$0xff] }
  0x48   :  { %1466 = vmatpush3.msra.mxu0 %v528_v6  ;;  %v736_v6 = vld [vmem:[#allocation2 + $0x180] sm:$0xff] }
  0x49   :  { %1467 = vmatprep.subr.mxu0 %v543_v7  ;;  %v735_v7 = vld [vmem:[#allocation2 + $0x178] sm:$0xff] }
  0x4a   :  { %1468 = vmatpush3.msra.mxu0 %v527_v8  ;;  %v734_v8 = vld [vmem:[#allocation2 + $0x170] sm:$0xff] }
  0x4b   :  { %1469 = vmatprep.subr.mxu0 %v542_v9  ;;  %v733_v9 = vld [vmem:[#allocation2 + $0x168] sm:$0xff] }
  0x4c   :  { %1470 = vmatpush3.msra.mxu0 %v526_v10  ;;  %v732_v10 = vld [vmem:[#allocation2 + $0x160] sm:$0xff] }
  0x4d   :  { %1471 = vmatprep.subr.mxu0 %v541_v11  ;;  %v731_v11 = vld [vmem:[#allocation2 + $0x158] sm:$0xff] }
  0x4e   :  { %1472 = vmatpush3.msra.mxu0 %v525_v12  ;;  %v730_v12 = vld [vmem:[#allocation2 + $0x150] sm:$0xff] }
  0x4f   :  { %1473 = vmatprep.subr.mxu0 %v540_v13  ;;  %v729_v13 = vld [vmem:[#allocation2 + $0x148] sm:$0xff] }
  0x50   :  { %1474 = vmatpush3.msra.mxu0 %v524_v47 }
  0x51   :  { %1475 = vmatprep.subr.mxu0 %v539_v48 }
  0x52   :  { %1476 = vmatpush3.msra.mxu0 %v523_v49 }
  0x53   :  { %1477 = vmatprep.subr.mxu0 %v538_v50 }
  0x54   :  { %1478 = vmatpush3.msra.mxu0 %v522_v51 }
  0x55   :  { %1479 = vmatprep.subr.mxu0 %v537_v53 }
  0x56   :  { %1480 = vmatpush3.msra.mxu0 %v521_v54 }
  0xe5   :  { %v1651_v14 = vpop.f32.mrf.mxu0 }
  0xe6   :  { %v1964_v19 = vadd.f32 %v1651_v14, %v1406_v15  ;;  %v728_v14 = vld [vmem:[#allocation2 + $0x140] sm:$0xff] }
  0xe7   :  { %v205_v16 = vpop.f32.mrf.mxu0 }
  0xe8   :  { %v1960_v17 = vadd.f32 %v1406_v15, %v205_v16  ;;  %v726_v16 = vld [vmem:[#allocation2 + $0x130] sm:$0xff] }
  0xe9   :  { %v1654_v18 = vpop.f32.mrf.mxu0 }
  0xea   :  { %393 = vmatmul.mubr.f32.vlgmr.msra.gmra.mxu1 %v1960_v17  ;;  %v1972_v23 = vadd.f32 %v1654_v18, %v1406_v15  ;;  %v725_v18 = vld [vmem:[#allocation2 + $0x128] sm:$0xff] }
  0xeb   :  { %398 = vmatprep.mubr.f32.mxu1 %v1818_v52  ;;  %v215_v20 = vpop.f32.mrf.mxu0  ;;  %766 = vmatpush1.msra.mxu1 %v750_v56 }
  0xec   :  { %v1968_v21 = vadd.f32 %v1406_v15, %v215_v20  ;;  %767 = vmatprep.subr.mxu1 %v749_v57  ;;  %v724_v20 = vld [vmem:[#allocation2 + $0x120] sm:$0xff] }
  0xed   :  { %v1657_v22 = vpop.f32.mrf.mxu0  ;;  %768 = vmatpush1.msra.mxu1 %v748_v58 }
  0xee   :  { %399 = vmatmul.mubr.f32.gmra.mxu1 %v1964_v19  ;;  %v1980_v27 = vadd.f32 %v1657_v22, %v1406_v15  ;;  %769 = vmatprep.subr.mxu1 %v747_v59  ;;  %v318_v22 = vlaneseq }
  0xef   :  { %404 = vmatprep.mubr.f32.mxu1 %v1818_v52  ;;  %v225_v24 = vpop.f32.mrf.mxu0  ;;  %770 = vmatpush1.msra.mxu1 %v746_v60 }
  0xf0   :  { %v1976_v25 = vadd.f32 %v1406_v15, %v225_v24  ;;  %771 = vmatprep.subr.mxu1 %v745_v61  ;;  %v2024_v24 = vshrl.u32 %v318_v22, 7 }
  0xf1   :  { %v1660_v26 = vpop.f32.mrf.mxu0  ;;  %772 = vmatpush1.msra.mxu1 %v744_v62 }
  0xf2   :  { %405 = vmatmul.mubr.f32.gmra.mxu1 %v1968_v21  ;;  %v1988_v31 = vadd.f32 %v1660_v26, %v1406_v15  ;;  %773 = vmatprep.subr.mxu1 %v743_v63  ;;  %v320_v26 = vsub.s32 0, %v2024_v24 }
  0xf3   :  { %410 = vmatprep.mubr.f32.mxu1 %v1818_v52  ;;  %v235_v28 = vpop.f32.mrf.mxu0  ;;  %774 = vmatpush1.msra.mxu1 %v742_v0 }
  0xf4   :  { %v1984_v29 = vadd.f32 %v1406_v15, %v235_v28  ;;  %775 = vmatprep.subr.mxu1 %v741_v1  ;;  %v316_v28 = vld [vmem:[%s2412_s4] ss:$2 sm:$0x3] }
  0xf5   :  { %v1663_v30 = vpop.f32.mrf.mxu0  ;;  %776 = vmatpush1.msra.mxu1 %v740_v2 }
  0xf6   :  { %411 = vmatmul.mubr.f32.gmra.mxu1 %v1972_v23  ;;  %v1996_v35 = vadd.f32 %v1663_v30, %v1406_v15  ;;  %777 = vmatprep.subr.mxu1 %v739_v3  ;;  %v324_v30 = vsub.s32 1, %v2024_v24 }
  0xf7   :  { %416 = vmatprep.mubr.f32.mxu1 %v1818_v52  ;;  %v245_v32 = vpop.f32.mrf.mxu0  ;;  %778 = vmatpush1.msra.mxu1 %v738_v4 }
  0xf8   :  { %v1992_v33 = vadd.f32 %v1406_v15, %v245_v32  ;;  %779 = vmatprep.subr.mxu1 %v737_v5  ;;  %v2033_v32 = vrot.slane %v316_v28, %v320_v26 }
  0xf9   :  { %v1666_v34 = vpop.f32.mrf.mxu0  ;;  %780 = vmatpush1.msra.mxu1 %v736_v6 }
  0xfa   :  { %417 = vmatmul.mubr.f32.gmra.mxu1 %v1976_v25  ;;  %v2004_v39 = vadd.f32 %v1666_v34, %v1406_v15  ;;  %781 = vmatprep.subr.mxu1 %v735_v7  ;;  %v2037_v34 = vrot.slane %v316_v28, %v324_v30 }
  0xfb   :  { %422 = vmatprep.mubr.f32.mxu1 %v1818_v52  ;;  %v255_v36 = vpop.f32.mrf.mxu0  ;;  %782 = vmatpush1.msra.mxu1 %v734_v8 }
  0xfc   :  { %v2000_v37 = vadd.f32 %v1406_v15, %v255_v36  ;;  %783 = vmatprep.subr.mxu1 %v733_v9 }
  0xfd   :  { %v1669_v38 = vpop.f32.mrf.mxu0  ;;  %784 = vmatpush1.msra.mxu1 %v732_v10 }
  0xfe   :  { %423 = vmatmul.mubr.f32.gmra.mxu1 %v1980_v27  ;;  %v2012_v43 = vadd.f32 %v1669_v38, %v1406_v15  ;;  %785 = vmatprep.subr.mxu1 %v731_v11 }
  0xff   :  { %428 = vmatprep.mubr.f32.mxu1 %v1818_v52  ;;  %v265_v40 = vpop.f32.mrf.mxu0  ;;  %786 = vmatpush1.msra.mxu1 %v730_v12 }
 0x100   :  { %v2008_v41 = vadd.f32 %v1406_v15, %v265_v40  ;;  %787 = vmatprep.subr.mxu1 %v729_v13 }
 0x101   :  { %v1672_v42 = vpop.f32.mrf.mxu0  ;;  %788 = vmatpush1.msra.mxu1 %v728_v14 }
 0x102   :  { %429 = vmatmul.mubr.f32.gmra.mxu1 %v1984_v29  ;;  %v2020_v46 = vadd.f32 %v1672_v42, %v1406_v15 }
 0x103   :  { %434 = vmatprep.mubr.f32.mxu1 %v1818_v52  ;;  %v275_v44 = vpop.f32.mrf.mxu0 }
 0x104   :  { %v2016_v45 = vadd.f32 %v1406_v15, %v275_v44  ;;  %v727_v15 = vld [vmem:[#allocation2 + $0x138] sm:$0xff] }
 0x105   :  { %789 = vmatprep.subr.mxu1 %v727_v15 }
 0x106   :  { %435 = vmatmul.mubr.f32.gmra.mxu1 %v1988_v31 }
 0x107   :  { %440 = vmatprep.mubr.f32.mxu1 %v1818_v52  ;;  %790 = vmatpush1.msra.mxu1 %v726_v16 }
 0x108   :  { %791 = vmatprep.subr.mxu1 %v725_v18 }
 0x109   :  { %792 = vmatpush1.msra.mxu1 %v724_v20 }
 0x10a   :  { %441 = vmatmul.mubr.f32.gmra.mxu1 %v1992_v33 }
 0x10b   :  { %446 = vmatprep.mubr.f32.mxu1 %v1818_v52 }
 0x10e   :  { %447 = vmatmul.mubr.f32.gmra.mxu1 %v1996_v35 }
 0x10f   :  { %452 = vmatprep.mubr.f32.mxu1 %v1818_v52 }
 0x112   :  { %453 = vmatmul.mubr.f32.gmra.mxu1 %v2000_v37 }
 0x113   :  { %458 = vmatprep.mubr.f32.mxu1 %v1818_v52 }
 0x116   :  { %459 = vmatmul.mubr.f32.gmra.mxu1 %v2004_v39 }
 0x117   :  { %464 = vmatprep.mubr.f32.mxu1 %v1818_v52 }
 0x11a   :  { %465 = vmatmul.mubr.f32.gmra.mxu1 %v2008_v41 }
 0x11b   :  { %470 = vmatprep.mubr.f32.mxu1 %v1818_v52 }
 0x11e   :  { %471 = vmatmul.mubr.f32.gmra.mxu1 %v2012_v43 }
 0x11f   :  { %476 = vmatprep.mubr.f32.mxu1 %v1818_v52 }
 0x122   :  { %477 = vmatmul.mubr.f32.gmra.mxu1 %v2016_v45 }
 0x123   :  { %482 = vmatprep.mubr.f32.mxu1 %v1818_v52 }
 0x126   :  { %483 = vmatmul.mubr.f32.gmra.mxu1 %v2020_v46 }
 0x127   :  { %829 = vmatprep.mubr.f32.mxu1 %v1818_v52 }
 0x1aa   :  { %v394_v36 = vpop.f32.mrf.mxu1 }
 0x1ab   :  { %v395_v38 = vadd.f32 %v394_v36, %v2033_v32 }
 0x1ac   :  { %v396_v40 = vpop.f32.mrf.mxu1 }
 0x1ad   :  { %v397_v42 = vadd.f32 %v396_v40, %v2037_v34  ;;  %v489_v48 = vmax.f32 %v395_v38, 0.0 }
 0x1ae   :  { %v400_v44 = vpop.f32.mrf.mxu1 }
 0x1af   :  { %v490_v47 = vmax.f32 %v397_v42, 0.0  ;;  %v401_v49 = vadd.f32 %v400_v44, %v2033_v32 }
 0x1b0   :  { %v402_v50 = vpop.f32.mrf.mxu1 }
 0x1b1   :  { %v403_v51 = vadd.f32 %v402_v50, %v2037_v34  ;;  %622 = vmatprep.mubr.f32.mxu0 %v490_v47  ;;  %v491_v55 = vmax.f32 %v401_v49, 0.0 }
 0x1b2   :  { %v406_v53 = vpop.f32.mrf.mxu1  ;;  %623 = vmatmul.mubr.f32.vlgmr.msra.gmra.mxu0 %v489_v48 }
 0x1b3   :  { %v492_v54 = vmax.f32 %v403_v51, 0.0  ;;  %v407_v56 = vadd.f32 %v406_v53, %v2033_v32 }
 0x1b4   :  { %v408_v57 = vpop.f32.mrf.mxu1 }
 0x1b5   :  { %v409_v58 = vadd.f32 %v408_v57, %v2037_v34  ;;  %627 = vmatprep.mubr.f32.mxu0 %v492_v54  ;;  %v493_v61 = vmax.f32 %v407_v56, 0.0 }
 0x1b6   :  { %v412_v59 = vpop.f32.mrf.mxu1  ;;  %628 = vmatmul.mubr.f32.gmra.mxu0 %v491_v55 }
 0x1b7   :  { %v494_v60 = vmax.f32 %v409_v58, 0.0  ;;  %v413_v62 = vadd.f32 %v412_v59, %v2033_v32 }
 0x1b8   :  { %v414_v63 = vpop.f32.mrf.mxu1 }
 0x1b9   :  { %v415_v0 = vadd.f32 %v414_v63, %v2037_v34  ;;  %632 = vmatprep.mubr.f32.mxu0 %v494_v60  ;;  %v495_v3 = vmax.f32 %v413_v62, 0.0 }
 0x1ba   :  { %v418_v1 = vpop.f32.mrf.mxu1  ;;  %633 = vmatmul.mubr.f32.gmra.mxu0 %v493_v61 }
 0x1bb   :  { %v496_v2 = vmax.f32 %v415_v0, 0.0  ;;  %v419_v4 = vadd.f32 %v418_v1, %v2033_v32 }
 0x1bc   :  { %v420_v5 = vpop.f32.mrf.mxu1 }
 0x1bd   :  { %v421_v6 = vadd.f32 %v420_v5, %v2037_v34  ;;  %637 = vmatprep.mubr.f32.mxu0 %v496_v2  ;;  %v497_v9 = vmax.f32 %v419_v4, 0.0 }
 0x1be   :  { %v424_v7 = vpop.f32.mrf.mxu1  ;;  %638 = vmatmul.mubr.f32.gmra.mxu0 %v495_v3 }
 0x1bf   :  { %v498_v8 = vmax.f32 %v421_v6, 0.0  ;;  %v425_v10 = vadd.f32 %v424_v7, %v2033_v32 }
 0x1c0   :  { %v426_v11 = vpop.f32.mrf.mxu1 }
 0x1c1   :  { %v427_v12 = vadd.f32 %v426_v11, %v2037_v34  ;;  %642 = vmatprep.mubr.f32.mxu0 %v498_v8  ;;  %v499_v15 = vmax.f32 %v425_v10, 0.0 }
 0x1c2   :  { %v430_v13 = vpop.f32.mrf.mxu1  ;;  %643 = vmatmul.mubr.f32.gmra.mxu0 %v497_v9 }
 0x1c3   :  { %v500_v14 = vmax.f32 %v427_v12, 0.0  ;;  %v431_v16 = vadd.f32 %v430_v13, %v2033_v32 }
 0x1c4   :  { %v432_v18 = vpop.f32.mrf.mxu1 }
 0x1c5   :  { %v433_v20 = vadd.f32 %v432_v18, %v2037_v34  ;;  %647 = vmatprep.mubr.f32.mxu0 %v500_v14  ;;  %v501_v36 = vmax.f32 %v431_v16, 0.0 }
 0x1c6   :  { %v436_v22 = vpop.f32.mrf.mxu1  ;;  %648 = vmatmul.mubr.f32.gmra.mxu0 %v499_v15 }
 0x1c7   :  { %v502_v28 = vmax.f32 %v433_v20, 0.0  ;;  %v437_v38 = vadd.f32 %v436_v22, %v2033_v32 }
 0x1c8   :  { %v438_v40 = vpop.f32.mrf.mxu1 }
 0x1c9   :  { %v439_v42 = vadd.f32 %v438_v40, %v2037_v34  ;;  %652 = vmatprep.mubr.f32.mxu0 %v502_v28  ;;  %v503_v48 = vmax.f32 %v437_v38, 0.0 }
 0x1ca   :  { %v442_v44 = vpop.f32.mrf.mxu1  ;;  %653 = vmatmul.mubr.f32.gmra.mxu0 %v501_v36 }
 0x1cb   :  { %v504_v47 = vmax.f32 %v439_v42, 0.0  ;;  %v443_v49 = vadd.f32 %v442_v44, %v2033_v32 }
 0x1cc   :  { %v444_v50 = vpop.f32.mrf.mxu1 }
 0x1cd   :  { %v445_v51 = vadd.f32 %v444_v50, %v2037_v34  ;;  %657 = vmatprep.mubr.f32.mxu0 %v504_v47  ;;  %v505_v55 = vmax.f32 %v443_v49, 0.0 }
 0x1ce   :  { %v448_v53 = vpop.f32.mrf.mxu1  ;;  %658 = vmatmul.mubr.f32.gmra.mxu0 %v503_v48 }
 0x1cf   :  { %v506_v54 = vmax.f32 %v445_v51, 0.0  ;;  %v449_v56 = vadd.f32 %v448_v53, %v2033_v32 }
 0x1d0   :  { %v450_v57 = vpop.f32.mrf.mxu1 }
 0x1d1   :  { %v451_v58 = vadd.f32 %v450_v57, %v2037_v34  ;;  %662 = vmatprep.mubr.f32.mxu0 %v506_v54  ;;  %v507_v61 = vmax.f32 %v449_v56, 0.0  ;;  %v722_v56 = vld [vmem:[#allocation2 + $0x110] sm:$0xff]  ;;  %v721_v57 = vld [vmem:[#allocation2 + $0x108] sm:$0xff] }
 0x1d2   :  { %v454_v59 = vpop.f32.mrf.mxu1  ;;  %663 = vmatmul.mubr.f32.gmra.mxu0 %v505_v55  ;;  %v723_v55 = vld [vmem:[#allocation2 + $0x118] sm:$0xff] }
 0x1d3   :  { %v508_v60 = vmax.f32 %v451_v58, 0.0  ;;  %v455_v62 = vadd.f32 %v454_v59, %v2033_v32  ;;  %793 = vmatprep.subr.mxu1 %v723_v55  ;;  %v720_v58 = vld [vmem:[#allocation2 + $0x100] sm:$0xff]  ;;  %v990_v59 = vld [vmem:[#allocation4 + $0x1f8] sm:$0xff] }
 0x1d4   :  { %v456_v63 = vpop.f32.mrf.mxu1  ;;  %794 = vmatpush1.msra.mxu1 %v722_v56  ;;  %1529 = vmatprep.subr.mxu0 %v990_v59 }
 0x1d5   :  { %v457_v0 = vadd.f32 %v456_v63, %v2037_v34  ;;  %667 = vmatprep.mubr.f32.mxu0 %v508_v60  ;;  %v509_v3 = vmax.f32 %v455_v62, 0.0  ;;  %795 = vmatprep.subr.mxu1 %v721_v57  ;;  %v974_v60 = vld [vmem:[#allocation4 + $0x178] sm:$0xff]  ;;  %v972_v62 = vld [vmem:[#allocation4 + $0x168] sm:$0xff]  ;;  %v987_v63 = vld [vmem:[#allocation4 + $0x1e0] sm:$0xff] }
 0x1d6   :  { %v460_v1 = vpop.f32.mrf.mxu1  ;;  %668 = vmatmul.mubr.f32.gmra.mxu0 %v507_v61  ;;  %796 = vmatpush1.msra.mxu1 %v720_v58  ;;  %v973_v61 = vld [vmem:[#allocation4 + $0x170] sm:$0xff] }
 0x1d7   :  { %v510_v2 = vmax.f32 %v457_v0, 0.0  ;;  %v461_v4 = vadd.f32 %v460_v1, %v2033_v32  ;;  %1530 = vmatpush3.msra.mxu0 %v974_v60  ;;  %v971_v0 = vld [vmem:[#allocation4 + $0x160] sm:$0xff]  ;;  %v986_v1 = vld [vmem:[#allocation4 + $0x1d8] sm:$0xff] }
 0x1d8   :  { %v462_v5 = vpop.f32.mrf.mxu1 }
 0x1d9   :  { %v463_v6 = vadd.f32 %v462_v5, %v2037_v34  ;;  %672 = vmatprep.mubr.f32.mxu0 %v510_v2  ;;  %v511_v9 = vmax.f32 %v461_v4, 0.0  ;;  %v970_v2 = vld [vmem:[#allocation4 + $0x158] sm:$0xff]  ;;  %v969_v4 = vld [vmem:[#allocation4 + $0x150] sm:$0xff]  ;;  %v984_v5 = vld [vmem:[#allocation4 + $0x1c8] sm:$0xff] }
 0x1da   :  { %v466_v7 = vpop.f32.mrf.mxu1  ;;  %673 = vmatmul.mubr.f32.gmra.mxu0 %v509_v3  ;;  %v985_v3 = vld [vmem:[#allocation4 + $0x1d0] sm:$0xff] }
 0x1db   :  { %v512_v8 = vmax.f32 %v463_v6, 0.0  ;;  %v467_v10 = vadd.f32 %v466_v7, %v2033_v32  ;;  %v968_v6 = vld [vmem:[#allocation4 + $0x148] sm:$0xff]  ;;  %v983_v7 = vld [vmem:[#allocation4 + $0x1c0] sm:$0xff] }
 0x1dc   :  { %v468_v11 = vpop.f32.mrf.mxu1 }
 0x1dd   :  { %v469_v12 = vadd.f32 %v468_v11, %v2037_v34  ;;  %677 = vmatprep.mubr.f32.mxu0 %v512_v8  ;;  %v513_v15 = vmax.f32 %v467_v10, 0.0  ;;  %v967_v8 = vld [vmem:[#allocation4 + $0x140] sm:$0xff]  ;;  %v966_v10 = vld [vmem:[#allocation4 + $0x138] sm:$0xff]  ;;  %v981_v11 = vld [vmem:[#allocation4 + $0x1b0] sm:$0xff] }
 0x1de   :  { %v472_v13 = vpop.f32.mrf.mxu1  ;;  %678 = vmatmul.mubr.f32.gmra.mxu0 %v511_v9  ;;  %v982_v9 = vld [vmem:[#allocation4 + $0x1b8] sm:$0xff] }
 0x1df   :  { %v514_v14 = vmax.f32 %v469_v12, 0.0  ;;  %v473_v16 = vadd.f32 %v472_v13, %v2033_v32  ;;  %v965_v12 = vld [vmem:[#allocation4 + $0x130] sm:$0xff]  ;;  %v980_v13 = vld [vmem:[#allocation4 + $0x1a8] sm:$0xff] }
 0x1e0   :  { %v474_v18 = vpop.f32.mrf.mxu1 }
 0x1e1   :  { %v475_v20 = vadd.f32 %v474_v18, %v2037_v34  ;;  %682 = vmatprep.mubr.f32.mxu0 %v514_v14  ;;  %v515_v36 = vmax.f32 %v473_v16, 0.0  ;;  %v964_v14 = vld [vmem:[#allocation4 + $0x128] sm:$0xff]  ;;  %v963_v16 = vld [vmem:[#allocation4 + $0x120] sm:$0xff]  ;;  %v978_v18 = vld [vmem:[#allocation4 + $0x198] sm:$0xff] }
 0x1e2   :  { %v478_v22 = vpop.f32.mrf.mxu1  ;;  %683 = vmatmul.mubr.f32.gmra.mxu0 %v513_v15  ;;  %v979_v15 = vld [vmem:[#allocation4 + $0x1a0] sm:$0xff] }
 0x1e3   :  { %v516_v28 = vmax.f32 %v475_v20, 0.0  ;;  %v479_v38 = vadd.f32 %v478_v22, %v2033_v32  ;;  %v962_v20 = vld [vmem:[#allocation4 + $0x118] sm:$0xff]  ;;  %v977_v22 = vld [vmem:[#allocation4 + $0x190] sm:$0xff] }
 0x1e4   :  { %v480_v40 = vpop.f32.mrf.mxu1 }
 0x1e5   :  { %v481_v42 = vadd.f32 %v480_v40, %v2037_v34  ;;  %687 = vmatprep.mubr.f32.mxu0 %v516_v28  ;;  %v517_v48 = vmax.f32 %v479_v38, 0.0  ;;  %v961_v28 = vld [vmem:[#allocation4 + $0x110] sm:$0xff]  ;;  %v2074_v40 = vld [vmem:[%s2414_s6] ss:$0 sm:$0xff] }
 0x1e6   :  { %v484_v44 = vpop.f32.mrf.mxu1  ;;  %688 = vmatmul.mubr.f32.gmra.mxu0 %v515_v36  ;;  %v976_v36 = vld [vmem:[#allocation4 + $0x188] sm:$0xff] }
 0x1e7   :  { %v518_v47 = vmax.f32 %v481_v42, 0.0  ;;  %v485_v49 = vadd.f32 %v484_v44, %v2033_v32  ;;  %v989_v32 = vld [vmem:[#allocation4 + $0x1f0] sm:$0xff] }
 0x1e8   :  { %v486_v50 = vpop.f32.mrf.mxu1  ;;  %1531 = vmatprep.subr.mxu0 %v989_v32 }
 0x1e9   :  { %v487_v51 = vadd.f32 %v486_v50, %v2037_v34  ;;  %692 = vmatprep.mubr.f32.mxu0 %v518_v47  ;;  %v519_v54 = vmax.f32 %v485_v49, 0.0  ;;  %v988_v34 = vld [vmem:[#allocation4 + $0x1e8] sm:$0xff]  ;;  %1532 = vmatpush3.msra.mxu0 %v973_v61 }
 0x1ea   :  { %693 = vmatmul.mubr.f32.gmra.mxu0 %v517_v48  ;;  %1533 = vmatprep.subr.mxu0 %v988_v34 }
 0x1eb   :  { %v520_v53 = vmax.f32 %v487_v51, 0.0  ;;  %1534 = vmatpush3.msra.mxu0 %v972_v62 }
 0x1ec   :  { %1535 = vmatprep.subr.mxu0 %v987_v63 }
 0x1ed   :  { %697 = vmatprep.mubr.f32.mxu0 %v520_v53  ;;  %1536 = vmatpush3.msra.mxu0 %v971_v0 }
 0x1ee   :  { %698 = vmatmul.mubr.f32.gmra.mxu0 %v519_v54  ;;  %1537 = vmatprep.subr.mxu0 %v986_v1 }
 0x1ef   :  { %1538 = vmatpush3.msra.mxu0 %v970_v2 }
 0x1f0   :  { %1539 = vmatprep.subr.mxu0 %v985_v3 }
 0x1f1   :  { %1540 = vmatpush3.msra.mxu0 %v969_v4 }
 0x1f2   :  { %1541 = vmatprep.subr.mxu0 %v984_v5 }
 0x1f3   :  { %1542 = vmatpush3.msra.mxu0 %v968_v6 }
 0x1f4   :  { %1543 = vmatprep.subr.mxu0 %v983_v7 }
 0x1f5   :  { %1544 = vmatpush3.msra.mxu0 %v967_v8 }
 0x1f6   :  { %1545 = vmatprep.subr.mxu0 %v982_v9 }
 0x1f7   :  { %1546 = vmatpush3.msra.mxu0 %v966_v10 }
 0x1f8   :  { %1547 = vmatprep.subr.mxu0 %v981_v11 }
 0x1f9   :  { %1548 = vmatpush3.msra.mxu0 %v965_v12 }
 0x1fa   :  { %1549 = vmatprep.subr.mxu0 %v980_v13 }
 0x1fb   :  { %1550 = vmatpush3.msra.mxu0 %v964_v14 }
 0x1fc   :  { %1551 = vmatprep.subr.mxu0 %v979_v15 }
 0x1fd   :  { %1552 = vmatpush3.msra.mxu0 %v963_v16 }
 0x1fe   :  { %1553 = vmatprep.subr.mxu0 %v978_v18 }
 0x1ff   :  { %1554 = vmatpush3.msra.mxu0 %v962_v20 }
 0x200   :  { %1555 = vmatprep.subr.mxu0 %v977_v22 }
 0x201   :  { %1556 = vmatpush3.msra.mxu0 %v961_v28 }
 0x202   :  { %1557 = vmatprep.subr.mxu0 %v976_v36 }
 0x272   :  { %v1481_v38 = vpop.f32.mrf.mxu0 }
 0x274   :  { %v1482_v42 = vpop.f32.mrf.mxu0 }
 0x275   :  { %v1483_v44 = vadd.f32 %v1482_v42, %v1481_v38 }
 0x276   :  { %v1484_v47 = vpop.f32.mrf.mxu0 }
 0x277   :  { %v625_v48 = vadd.f32 %v1483_v44, %v2074_v40 }
 0x278   :  { %v1485_v49 = vpop.f32.mrf.mxu0 }
 0x279   :  { %v2078_v50 = vadd.f32 %v625_v48, %v1960_v17  ;;  %v1486_v51 = vadd.f32 %v1485_v49, %v1484_v47 }
 0x27a   :  { %v1487_v53 = vpop.f32.mrf.mxu0 }
 0x27b   :  { %v630_v54 = vadd.f32 %v1486_v51, %v2074_v40  ;;  %830 = vmatmul.mubr.f32.vlgmr.msra.gmra.mxu1 %v2078_v50 }
 0x27c   :  { %v1488_v55 = vpop.f32.mrf.mxu0  ;;  %835 = vmatprep.mubr.f32.mxu1 %v1818_v52 }
 0x27d   :  { %v1489_v56 = vadd.f32 %v1488_v55, %v1487_v53  ;;  %v2084_v57 = vadd.f32 %v630_v54, %v1964_v19 }
 0x27e   :  { %v1490_v58 = vpop.f32.mrf.mxu0 }
 0x27f   :  { %v635_v59 = vadd.f32 %v1489_v56, %v2074_v40  ;;  %836 = vmatmul.mubr.f32.gmra.mxu1 %v2084_v57 }
 0x280   :  { %v1491_v17 = vpop.f32.mrf.mxu0  ;;  %841 = vmatprep.mubr.f32.mxu1 %v1818_v52 }
 0x281   :  { %v1492_v60 = vadd.f32 %v1491_v17, %v1490_v58  ;;  %v2090_v32 = vadd.f32 %v635_v59, %v1968_v21 }
 0x282   :  { %v1493_v61 = vpop.f32.mrf.mxu0 }
 0x283   :  { %v640_v34 = vadd.f32 %v1492_v60, %v2074_v40  ;;  %842 = vmatmul.mubr.f32.gmra.mxu1 %v2090_v32 }
 0x284   :  { %v1494_v62 = vpop.f32.mrf.mxu0  ;;  %847 = vmatprep.mubr.f32.mxu1 %v1818_v52 }
 0x285   :  { %v1495_v19 = vadd.f32 %v1494_v62, %v1493_v61  ;;  %v2096_v63 = vadd.f32 %v640_v34, %v1972_v23 }
 0x286   :  { %v1496_v0 = vpop.f32.mrf.mxu0 }
 0x287   :  { %v645_v1 = vadd.f32 %v1495_v19, %v2074_v40  ;;  %848 = vmatmul.mubr.f32.gmra.mxu1 %v2096_v63 }
 0x288   :  { %v1497_v2 = vpop.f32.mrf.mxu0  ;;  %853 = vmatprep.mubr.f32.mxu1 %v1818_v52 }
 0x289   :  { %v1498_v21 = vadd.f32 %v1497_v2, %v1496_v0  ;;  %v2102_v3 = vadd.f32 %v645_v1, %v1976_v25 }
 0x28a   :  { %v1499_v4 = vpop.f32.mrf.mxu0 }
 0x28b   :  { %v650_v5 = vadd.f32 %v1498_v21, %v2074_v40  ;;  %854 = vmatmul.mubr.f32.gmra.mxu1 %v2102_v3 }
 0x28c   :  { %v1500_v6 = vpop.f32.mrf.mxu0  ;;  %859 = vmatprep.mubr.f32.mxu1 %v1818_v52 }
 0x28d   :  { %v1501_v23 = vadd.f32 %v1500_v6, %v1499_v4  ;;  %v2108_v7 = vadd.f32 %v650_v5, %v1980_v27  ;;  %v960_v4 = vld [vmem:[#allocation4 + $0x108] sm:$0xff]  ;;  %v975_v5 = vld [vmem:[#allocation4 + $0x180] sm:$0xff] }
 0x28e   :  { %v1502_v8 = vpop.f32.mrf.mxu0  ;;  %1558 = vmatpush3.msra.mxu0 %v960_v4  ;;  %v959_v6 = vld [vmem:[#allocation4 + $0x100] sm:$0xff] }
 0x28f   :  { %v655_v9 = vadd.f32 %v1501_v23, %v2074_v40  ;;  %860 = vmatmul.mubr.f32.gmra.mxu1 %v2108_v7  ;;  %1559 = vmatprep.subr.mxu0 %v975_v5  ;;  %v1226_v23 = vld [vmem:[%s2416_s8 + $0x58] sm:$0xff] }
 0x290   :  { %v1503_v10 = vpop.f32.mrf.mxu0  ;;  %865 = vmatprep.mubr.f32.mxu1 %v1818_v52  ;;  %1560 = vmatpush3.msra.mxu0 %v959_v6 }
 0x291   :  { %v1504_v25 = vadd.f32 %v1503_v10, %v1502_v8  ;;  %v2114_v11 = vadd.f32 %v655_v9, %v1984_v29  ;;  %v1225_v8 = vld [vmem:[%s2416_s8 + $0x50] sm:$0xff]  ;;  %v1224_v9 = vld [vmem:[%s2416_s8 + $0x48] sm:$0xff]  ;;  %v1424_v10 = vld [vmem:[%s2412_s4 + $0x1] ss:$2 sm:$0x3] }
 0x292   :  { %v1505_v12 = vpop.f32.mrf.mxu0 }
 0x293   :  { %v660_v13 = vadd.f32 %v1504_v25, %v2074_v40  ;;  %866 = vmatmul.mubr.f32.gmra.mxu1 %v2114_v11  ;;  %v2197_v25 = vrot.slane %v1424_v10, %v320_v26 }
 0x294   :  { %v1506_v14 = vpop.f32.mrf.mxu0  ;;  %871 = vmatprep.mubr.f32.mxu1 %v1818_v52 }
 0x295   :  { %v1507_v27 = vadd.f32 %v1506_v14, %v1505_v12  ;;  %v2120_v15 = vadd.f32 %v660_v13, %v1988_v31  ;;  %v2201_v12 = vrot.slane %v1424_v10, %v324_v30 }
 0x296   :  { %v1508_v16 = vpop.f32.mrf.mxu0 }
 0x297   :  { %v665_v18 = vadd.f32 %v1507_v27, %v2074_v40  ;;  %872 = vmatmul.mubr.f32.gmra.mxu1 %v2120_v15 }
 0x298   :  { %v1509_v20 = vpop.f32.mrf.mxu0  ;;  %877 = vmatprep.mubr.f32.mxu1 %v1818_v52 }
 0x299   :  { %v1510_v29 = vadd.f32 %v1509_v20, %v1508_v16  ;;  %v2126_v22 = vadd.f32 %v665_v18, %v1992_v33 }
 0x29a   :  { %v1511_v28 = vpop.f32.mrf.mxu0 }
 0x29b   :  { %v670_v36 = vadd.f32 %v1510_v29, %v2074_v40  ;;  %878 = vmatmul.mubr.f32.gmra.mxu1 %v2126_v22 }
 0x29c   :  { %v1512_v38 = vpop.f32.mrf.mxu0  ;;  %883 = vmatprep.mubr.f32.mxu1 %v1818_v52 }
 0x29d   :  { %v1513_v31 = vadd.f32 %v1512_v38, %v1511_v28  ;;  %v2132_v42 = vadd.f32 %v670_v36, %v1996_v35 }
 0x29e   :  { %v1514_v44 = vpop.f32.mrf.mxu0 }
 0x29f   :  { %v675_v47 = vadd.f32 %v1513_v31, %v2074_v40  ;;  %884 = vmatmul.mubr.f32.gmra.mxu1 %v2132_v42 }
 0x2a0   :  { %v1515_v48 = vpop.f32.mrf.mxu0  ;;  %889 = vmatprep.mubr.f32.mxu1 %v1818_v52 }
 0x2a1   :  { %v1516_v33 = vadd.f32 %v1515_v48, %v1514_v44  ;;  %v2138_v49 = vadd.f32 %v675_v47, %v2000_v37 }
 0x2a2   :  { %v1517_v51 = vpop.f32.mrf.mxu0 }
 0x2a3   :  { %v680_v53 = vadd.f32 %v1516_v33, %v2074_v40  ;;  %890 = vmatmul.mubr.f32.gmra.mxu1 %v2138_v49 }
 0x2a4   :  { %v1518_v54 = vpop.f32.mrf.mxu0  ;;  %895 = vmatprep.mubr.f32.mxu1 %v1818_v52 }
 0x2a5   :  { %v1519_v35 = vadd.f32 %v1518_v54, %v1517_v51  ;;  %v2144_v55 = vadd.f32 %v680_v53, %v2004_v39 }
 0x2a6   :  { %v1520_v56 = vpop.f32.mrf.mxu0 }
 0x2a7   :  { %v685_v58 = vadd.f32 %v1519_v35, %v2074_v40  ;;  %896 = vmatmul.mubr.f32.gmra.mxu1 %v2144_v55 }
 0x2a8   :  { %v1521_v59 = vpop.f32.mrf.mxu0  ;;  %901 = vmatprep.mubr.f32.mxu1 %v1818_v52 }
 0x2a9   :  { %v1522_v37 = vadd.f32 %v1521_v59, %v1520_v56  ;;  %v2150_v17 = vadd.f32 %v685_v58, %v2008_v41 }
 0x2aa   :  { %v1523_v60 = vpop.f32.mrf.mxu0 }
 0x2ab   :  { %v690_v61 = vadd.f32 %v1522_v37, %v2074_v40  ;;  %902 = vmatmul.mubr.f32.gmra.mxu1 %v2150_v17 }
 0x2ac   :  { %v1524_v34 = vpop.f32.mrf.mxu0  ;;  %907 = vmatprep.mubr.f32.mxu1 %v1818_v52 }
 0x2ad   :  { %v1525_v39 = vadd.f32 %v1524_v34, %v1523_v60  ;;  %v2156_v62 = vadd.f32 %v690_v61, %v2012_v43 }
 0x2ae   :  { %v1526_v19 = vpop.f32.mrf.mxu0 }
 0x2af   :  { %v695_v0 = vadd.f32 %v1525_v39, %v2074_v40  ;;  %908 = vmatmul.mubr.f32.gmra.mxu1 %v2156_v62 }
 0x2b0   :  { %v1527_v1 = vpop.f32.mrf.mxu0  ;;  %913 = vmatprep.mubr.f32.mxu1 %v1818_v52 }
 0x2b1   :  { %v1528_v41 = vadd.f32 %v1527_v1, %v1526_v19  ;;  %v2162_v2 = vadd.f32 %v695_v0, %v2016_v45  ;;  %v1230_v45 = vld [vmem:[%s2416_s8 + $0x78] sm:$0xff] }
 0x2b2   :  { %1673 = vmatprep.subr.mxu0 %v1230_v45  ;;  %1729 = vmatprep.subr.mxu1 %v1230_v45 }
 0x2b3   :  { %v700_v21 = vadd.f32 %v1528_v41, %v2074_v40  ;;  %914 = vmatmul.mubr.f32.gmra.mxu1 %v2162_v2  ;;  %v1227_v40 = vld [vmem:[%s2416_s8 + $0x60] sm:$0xff] }
 0x2b4   :  { %919 = vmatprep.mubr.f32.mxu1 %v1818_v52  ;;  %v1229_v52 = vld [vmem:[%s2416_s8 + $0x70] sm:$0xff]  ;;  %1745 = vmatpush3.msra.mxu1 %v1230_v45 }
 0x2b5   :  { %v2168_v43 = vadd.f32 %v700_v21, %v2020_v46  ;;  %1730 = vmatprep.subr.mxu1 %v1229_v52  ;;  %v1228_v46 = vld [vmem:[%s2416_s8 + $0x68] sm:$0xff] }
 0x2b6   :  { %1746 = vmatpush3.msra.mxu1 %v1229_v52 }
 0x2b7   :  { %920 = vmatmul.mubr.f32.gmra.mxu1 %v2168_v43  ;;  %1731 = vmatprep.subr.mxu1 %v1228_v46 }
 0x2b8   :  { %1747 = vmatpush3.msra.mxu1 %v1228_v46 }
 0x2b9   :  { %1732 = vmatprep.subr.mxu1 %v1227_v40 }
 0x2ba   :  { %1748 = vmatpush3.msra.mxu1 %v1227_v40 }
 0x2bb   :  { %1733 = vmatprep.subr.mxu1 %v1226_v23 }
 0x2bc   :  { %1749 = vmatpush3.msra.mxu1 %v1226_v23 }
 0x2bd   :  { %1734 = vmatprep.subr.mxu1 %v1225_v8 }
 0x2be   :  { %1750 = vmatpush3.msra.mxu1 %v1225_v8 }
 0x2bf   :  { %1735 = vmatprep.subr.mxu1 %v1224_v9 }
 0x2c0   :  { %1751 = vmatpush3.msra.mxu1 %v1224_v9 }
 0x33b   :  { %v831_v13 = vpop.f32.mrf.mxu1 }
 0x33c   :  { %v832_v14 = vadd.f32 %v831_v13, %v2197_v25 }
 0x33d   :  { %v833_v27 = vpop.f32.mrf.mxu1 }
 0x33e   :  { %v834_v16 = vadd.f32 %v833_v27, %v2201_v12  ;;  %v926_v29 = vmax.f32 %v832_v14, 0.0 }
 0x33f   :  { %v837_v18 = vpop.f32.mrf.mxu1 }
 0x340   :  { %v927_v20 = vmax.f32 %v834_v16, 0.0  ;;  %v838_v28 = vadd.f32 %v837_v18, %v2197_v25 }
 0x341   :  { %v839_v36 = vpop.f32.mrf.mxu1 }
 0x342   :  { %v840_v38 = vadd.f32 %v839_v36, %v2201_v12  ;;  %1060 = vmatprep.mubr.f32.mxu0 %v927_v20  ;;  %v928_v30 = vmax.f32 %v838_v28, 0.0 }
 0x343   :  { %v843_v26 = vpop.f32.mrf.mxu1  ;;  %1061 = vmatmul.mubr.f32.vlgmr.msra.gmra.mxu0 %v926_v29 }
 0x344   :  { %v929_v24 = vmax.f32 %v840_v38, 0.0  ;;  %1674 = vmatpush3.msra.mxu0 %v1230_v45  ;;  %v844_v31 = vadd.f32 %v843_v26, %v2197_v25 }
 0x345   :  { %v845_v44 = vpop.f32.mrf.mxu1  ;;  %1675 = vmatprep.subr.mxu0 %v1229_v52 }
 0x346   :  { %v846_v47 = vadd.f32 %v845_v44, %v2201_v12  ;;  %1065 = vmatprep.mubr.f32.mxu0 %v929_v24  ;;  %1676 = vmatpush3.msra.mxu0 %v1229_v52  ;;  %v930_v51 = vmax.f32 %v844_v31, 0.0 }
 0x347   :  { %v849_v48 = vpop.f32.mrf.mxu1  ;;  %1066 = vmatmul.mubr.f32.gmra.mxu0 %v928_v30  ;;  %1677 = vmatprep.subr.mxu0 %v1228_v46 }
 0x348   :  { %v931_v33 = vmax.f32 %v846_v47, 0.0  ;;  %1678 = vmatpush3.msra.mxu0 %v1228_v46  ;;  %v850_v53 = vadd.f32 %v849_v48, %v2197_v25 }
 0x349   :  { %v851_v54 = vpop.f32.mrf.mxu1  ;;  %1679 = vmatprep.subr.mxu0 %v1227_v40 }
 0x34a   :  { %v852_v35 = vadd.f32 %v851_v54, %v2201_v12  ;;  %1070 = vmatprep.mubr.f32.mxu0 %v931_v33  ;;  %1680 = vmatpush3.msra.mxu0 %v1227_v40  ;;  %v932_v59 = vmax.f32 %v850_v53, 0.0 }
 0x34b   :  { %v855_v56 = vpop.f32.mrf.mxu1  ;;  %1071 = vmatmul.mubr.f32.gmra.mxu0 %v930_v51  ;;  %1681 = vmatprep.subr.mxu0 %v1226_v23 }
 0x34c   :  { %v933_v58 = vmax.f32 %v852_v35, 0.0  ;;  %1682 = vmatpush3.msra.mxu0 %v1226_v23  ;;  %v856_v37 = vadd.f32 %v855_v56, %v2197_v25 }
 0x34d   :  { %v857_v60 = vpop.f32.mrf.mxu1  ;;  %1683 = vmatprep.subr.mxu0 %v1225_v8 }
 0x34e   :  { %v858_v61 = vadd.f32 %v857_v60, %v2201_v12  ;;  %1075 = vmatprep.mubr.f32.mxu0 %v933_v58  ;;  %1684 = vmatpush3.msra.mxu0 %v1225_v8  ;;  %v934_v19 = vmax.f32 %v856_v37, 0.0 }
 0x34f   :  { %v861_v34 = vpop.f32.mrf.mxu1  ;;  %1076 = vmatmul.mubr.f32.gmra.mxu0 %v932_v59  ;;  %1685 = vmatprep.subr.mxu0 %v1224_v9 }
 0x350   :  { %v935_v39 = vmax.f32 %v858_v61, 0.0  ;;  %1686 = vmatpush3.msra.mxu0 %v1224_v9  ;;  %v862_v0 = vadd.f32 %v861_v34, %v2197_v25 }
 0x351   :  { %v863_v1 = vpop.f32.mrf.mxu1 }
 0x352   :  { %v864_v41 = vadd.f32 %v863_v1, %v2201_v12  ;;  %1080 = vmatprep.mubr.f32.mxu0 %v935_v39  ;;  %v936_v5 = vmax.f32 %v862_v0, 0.0 }
 0x353   :  { %v867_v21 = vpop.f32.mrf.mxu1  ;;  %1081 = vmatmul.mubr.f32.gmra.mxu0 %v934_v19 }
 0x354   :  { %v937_v4 = vmax.f32 %v864_v41, 0.0  ;;  %v868_v6 = vadd.f32 %v867_v21, %v2197_v25 }
 0x355   :  { %v869_v45 = vpop.f32.mrf.mxu1 }
 0x356   :  { %v870_v52 = vadd.f32 %v869_v45, %v2201_v12  ;;  %1085 = vmatprep.mubr.f32.mxu0 %v937_v4  ;;  %v938_v23 = vmax.f32 %v868_v6, 0.0 }
 0x357   :  { %v873_v46 = vpop.f32.mrf.mxu1  ;;  %1086 = vmatmul.mubr.f32.gmra.mxu0 %v936_v5 }
 0x358   :  { %v939_v40 = vmax.f32 %v870_v52, 0.0  ;;  %v874_v8 = vadd.f32 %v873_v46, %v2197_v25 }
 0x359   :  { %v875_v9 = vpop.f32.mrf.mxu1 }
 0x35a   :  { %v876_v10 = vadd.f32 %v875_v9, %v2201_v12  ;;  %1090 = vmatprep.mubr.f32.mxu0 %v939_v40  ;;  %v940_v27 = vmax.f32 %v874_v8, 0.0 }
 0x35b   :  { %v879_v13 = vpop.f32.mrf.mxu1  ;;  %1091 = vmatmul.mubr.f32.gmra.mxu0 %v938_v23 }
 0x35c   :  { %v941_v14 = vmax.f32 %v876_v10, 0.0  ;;  %v880_v16 = vadd.f32 %v879_v13, %v2197_v25 }
 0x35d   :  { %v881_v18 = vpop.f32.mrf.mxu1 }
 0x35e   :  { %v882_v20 = vadd.f32 %v881_v18, %v2201_v12  ;;  %1095 = vmatprep.mubr.f32.mxu0 %v941_v14  ;;  %v942_v36 = vmax.f32 %v880_v16, 0.0  ;;  %v1223_v18 = vld [vmem:[%s2416_s8 + $0x40] sm:$0xff] }
 0x35f   :  { %v885_v29 = vpop.f32.mrf.mxu1  ;;  %1096 = vmatmul.mubr.f32.gmra.mxu0 %v940_v27  ;;  %1687 = vmatprep.subr.mxu0 %v1223_v18 }
 0x360   :  { %v943_v28 = vmax.f32 %v882_v20, 0.0  ;;  %v886_v38 = vadd.f32 %v885_v29, %v2197_v25  ;;  %1736 = vmatprep.subr.mxu1 %v1223_v18  ;;  %1688 = vmatpush3.msra.mxu0 %v1223_v18  ;;  %v1220_v20 = vld [vmem:[%s2416_s8 + $0x28] sm:$0xff]  ;;  %v1219_v29 = vld [vmem:[%s2416_s8 + $0x20] sm:$0xff] }
 0x361   :  { %v887_v26 = vpop.f32.mrf.mxu1  ;;  %1752 = vmatpush3.msra.mxu1 %v1223_v18 }
 0x362   :  { %v888_v24 = vadd.f32 %v887_v26, %v2201_v12  ;;  %1100 = vmatprep.mubr.f32.mxu0 %v943_v28  ;;  %v944_v44 = vmax.f32 %v886_v38, 0.0  ;;  %v1218_v28 = vld [vmem:[%s2416_s8 + $0x18] sm:$0xff]  ;;  %v1216_v38 = vld [vmem:[%s2416_s8 + $0x8] sm:$0xff]  ;;  %v1215_v26 = vld [vmem:[%s2416_s8] sm:$0xff] }
 0x363   :  { %v891_v30 = vpop.f32.mrf.mxu1  ;;  %1101 = vmatmul.mubr.f32.gmra.mxu0 %v942_v36  ;;  %v1217_v36 = vld [vmem:[%s2416_s8 + $0x10] sm:$0xff] }
 0x364   :  { %v945_v31 = vmax.f32 %v888_v24, 0.0  ;;  %v892_v47 = vadd.f32 %v891_v30, %v2197_v25  ;;  %v2265_v30 = vld [vmem:[%s2414_s6 + $0x1] ss:$0 sm:$0xff] }
 0x365   :  { %v893_v48 = vpop.f32.mrf.mxu1 }
 0x366   :  { %v894_v33 = vadd.f32 %v893_v48, %v2201_v12  ;;  %1105 = vmatprep.mubr.f32.mxu0 %v945_v31  ;;  %v946_v54 = vmax.f32 %v892_v47, 0.0 }
 0x367   :  { %v897_v51 = vpop.f32.mrf.mxu1  ;;  %1106 = vmatmul.mubr.f32.gmra.mxu0 %v944_v44 }
 0x368   :  { %v947_v53 = vmax.f32 %v894_v33, 0.0  ;;  %v898_v35 = vadd.f32 %v897_v51, %v2197_v25  ;;  %v2271_v51 = vld [vmem:[%s2415_s7] ss:$0 sm:$0xff] }
 0x369   :  { %v899_v56 = vpop.f32.mrf.mxu1 }
 0x36a   :  { %v900_v58 = vadd.f32 %v899_v56, %v2201_v12  ;;  %1110 = vmatprep.mubr.f32.mxu0 %v947_v53  ;;  %v948_v60 = vmax.f32 %v898_v35, 0.0  ;;  %v2277_v35 = vld [vmem:[%s2415_s7 + $0x1] ss:$0 sm:$0xff] }
 0x36b   :  { %v903_v59 = vpop.f32.mrf.mxu1  ;;  %1111 = vmatmul.mubr.f32.gmra.mxu0 %v946_v54 }
 0x36c   :  { %v949_v37 = vmax.f32 %v900_v58, 0.0  ;;  %v904_v61 = vadd.f32 %v903_v59, %v2197_v25 }
 0x36d   :  { %v905_v34 = vpop.f32.mrf.mxu1 }
 0x36e   :  { %v906_v39 = vadd.f32 %v905_v34, %v2201_v12  ;;  %1115 = vmatprep.mubr.f32.mxu0 %v949_v37  ;;  %v950_v1 = vmax.f32 %v904_v61, 0.0 }
 0x36f   :  { %v909_v19 = vpop.f32.mrf.mxu1  ;;  %1116 = vmatmul.mubr.f32.gmra.mxu0 %v948_v60 }
 0x370   :  { %v951_v0 = vmax.f32 %v906_v39, 0.0  ;;  %v910_v41 = vadd.f32 %v909_v19, %v2197_v25 }
 0x371   :  { %v911_v21 = vpop.f32.mrf.mxu1 }
 0x372   :  { %v912_v4 = vadd.f32 %v911_v21, %v2201_v12  ;;  %1120 = vmatprep.mubr.f32.mxu0 %v951_v0  ;;  %v952_v45 = vmax.f32 %v910_v41, 0.0 }
 0x373   :  { %v915_v5 = vpop.f32.mrf.mxu1  ;;  %1121 = vmatmul.mubr.f32.gmra.mxu0 %v950_v1 }
 0x374   :  { %v953_v6 = vmax.f32 %v912_v4, 0.0  ;;  %v916_v52 = vadd.f32 %v915_v5, %v2197_v25 }
 0x375   :  { %v917_v46 = vpop.f32.mrf.mxu1 }
 0x376   :  { %v918_v40 = vadd.f32 %v917_v46, %v2201_v12  ;;  %1125 = vmatprep.mubr.f32.mxu0 %v953_v6  ;;  %v954_v9 = vmax.f32 %v916_v52, 0.0 }
 0x377   :  { %v921_v23 = vpop.f32.mrf.mxu1  ;;  %1126 = vmatmul.mubr.f32.gmra.mxu0 %v952_v45 }
 0x378   :  { %v955_v8 = vmax.f32 %v918_v40, 0.0  ;;  %v922_v10 = vadd.f32 %v921_v23, %v2197_v25  ;;  %v1222_v25 = vld [vmem:[%s2416_s8 + $0x38] sm:$0xff] }
 0x379   :  { %v923_v13 = vpop.f32.mrf.mxu1  ;;  %1689 = vmatprep.subr.mxu0 %v1222_v25  ;;  %1737 = vmatprep.subr.mxu1 %v1222_v25 }
 0x37a   :  { %v924_v14 = vadd.f32 %v923_v13, %v2201_v12  ;;  %1130 = vmatprep.mubr.f32.mxu0 %v955_v8  ;;  %v956_v16 = vmax.f32 %v922_v10, 0.0  ;;  %1690 = vmatpush3.msra.mxu0 %v1222_v25  ;;  %v1221_v12 = vld [vmem:[%s2416_s8 + $0x30] sm:$0xff] }
 0x37b   :  { %1131 = vmatmul.mubr.f32.gmra.mxu0 %v954_v9  ;;  %1753 = vmatpush3.msra.mxu1 %v1222_v25 }
 0x37c   :  { %v957_v27 = vmax.f32 %v924_v14, 0.0  ;;  %1691 = vmatprep.subr.mxu0 %v1221_v12  ;;  %1738 = vmatprep.subr.mxu1 %v1221_v12 }
 0x37d   :  { %1692 = vmatpush3.msra.mxu0 %v1221_v12  ;;  %1754 = vmatpush3.msra.mxu1 %v1221_v12 }
 0x37e   :  { %1135 = vmatprep.mubr.f32.mxu0 %v957_v27  ;;  %1693 = vmatprep.subr.mxu0 %v1220_v20 }
 0x37f   :  { %1136 = vmatmul.mubr.f32.gmra.mxu0 %v956_v16  ;;  %1739 = vmatprep.subr.mxu1 %v1220_v20 }
 0x380   :  { %1694 = vmatpush3.msra.mxu0 %v1220_v20  ;;  %1755 = vmatpush3.msra.mxu1 %v1220_v20 }
 0x381   :  { %1695 = vmatprep.subr.mxu0 %v1219_v29  ;;  %1740 = vmatprep.subr.mxu1 %v1219_v29 }
 0x382   :  { %1696 = vmatpush3.msra.mxu0 %v1219_v29  ;;  %1756 = vmatpush3.msra.mxu1 %v1219_v29 }
 0x383   :  { %1697 = vmatprep.subr.mxu0 %v1218_v28  ;;  %1741 = vmatprep.subr.mxu1 %v1218_v28 }
 0x384   :  { %1698 = vmatpush3.msra.mxu0 %v1218_v28  ;;  %1757 = vmatpush3.msra.mxu1 %v1218_v28 }
 0x385   :  { %1699 = vmatprep.subr.mxu0 %v1217_v36  ;;  %1742 = vmatprep.subr.mxu1 %v1217_v36 }
 0x386   :  { %1700 = vmatpush3.msra.mxu0 %v1217_v36  ;;  %1758 = vmatpush3.msra.mxu1 %v1217_v36 }
 0x387   :  { %1701 = vmatprep.subr.mxu0 %v1216_v38  ;;  %1743 = vmatprep.subr.mxu1 %v1216_v38 }
 0x388   :  { %1702 = vmatpush3.msra.mxu0 %v1216_v38  ;;  %1759 = vmatpush3.msra.mxu1 %v1216_v38 }
 0x389   :  { %1703 = vmatprep.subr.mxu0 %v1215_v26  ;;  %1744 = vmatprep.subr.mxu1 %v1215_v26 }
 0x38a   :  { %1704 = vmatpush3.msra.mxu0 %v1215_v26  ;;  %1760 = vmatpush3.msra.mxu1 %v1215_v26 }
 0x403   :  { %v1561_v24 = vpop.f32.mrf.mxu0 }
 0x405   :  { %v1562_v31 = vpop.f32.mrf.mxu0 }
 0x406   :  { %v1563_v44 = vadd.f32 %v1562_v31, %v1561_v24 }
 0x407   :  { %v1564_v47 = vpop.f32.mrf.mxu0 }
 0x408   :  { %v1063_v48 = vadd.f32 %v1563_v44, %v2265_v30 }
 0x409   :  { %v1565_v33 = vpop.f32.mrf.mxu0 }
 0x40a   :  { %v1141_v53 = vadd.f32 %v1063_v48, %v2078_v50  ;;  %v1566_v54 = vadd.f32 %v1565_v33, %v1564_v47 }
 0x40b   :  { %v1567_v56 = vpop.f32.mrf.mxu0 }
 0x40c   :  { %v1068_v58 = vadd.f32 %v1566_v54, %v2265_v30  ;;  %v1162_v59 = vmul.f32 %v2271_v51, %v1141_v53 }
 0x40d   :  { %v1568_v37 = vpop.f32.mrf.mxu0 }
 0x40e   :  { %v1142_v60 = vadd.f32 %v1068_v58, %v2084_v57  ;;  %v1569_v61 = vadd.f32 %v1568_v37, %v1567_v56  ;;  %v1183_v34 = vadd.f32 %v2277_v35, %v1162_v59 }
 0x40f   :  { %v1570_v39 = vpop.f32.mrf.mxu0 }
 0x410   :  { %v1163_v50 = vmul.f32 %v2271_v51, %v1142_v60  ;;  %v1073_v19 = vadd.f32 %v1569_v61, %v2265_v30  ;;  %v1199_v0 = vmax.f32 %v1183_v34, 0.0 }
 0x411   :  { %v1571_v1 = vpop.f32.mrf.mxu0 }
 0x412   :  { %v1184_v41 = vadd.f32 %v2277_v35, %v1163_v50  ;;  %v1143_v21 = vadd.f32 %v1073_v19, %v2090_v32  ;;  %v1572_v4 = vadd.f32 %v1571_v1, %v1570_v39  ;;  %1705 = vmatprep.mubr.f32.mxu0 %v1199_v0 }
 0x413   :  { %v1573_v5 = vpop.f32.mrf.mxu0 }
 0x414   :  { %v1200_v6 = vmax.f32 %v1184_v41, 0.0  ;;  %v1078_v57 = vadd.f32 %v1572_v4, %v2265_v30  ;;  %v1164_v45 = vmul.f32 %v2271_v51, %v1143_v21 }
 0x415   :  { %v1574_v52 = vpop.f32.mrf.mxu0 }
 0x416   :  { %v1144_v46 = vadd.f32 %v1078_v57, %v2096_v63  ;;  %v1575_v40 = vadd.f32 %v1574_v52, %v1573_v5  ;;  %1706 = vmatmul.mubr.f32.vlgmr.msra.gmra.mxu0 %v1200_v6  ;;  %v1185_v23 = vadd.f32 %v2277_v35, %v1164_v45 }
 0x417   :  { %v1576_v8 = vpop.f32.mrf.mxu0 }
 0x418   :  { %v1083_v9 = vadd.f32 %v1575_v40, %v2265_v30  ;;  %v1201_v10 = vmax.f32 %v1185_v23, 0.0  ;;  %v1165_v32 = vmul.f32 %v2271_v51, %v1144_v46 }
 0x419   :  { %v1577_v13 = vpop.f32.mrf.mxu0 }
 0x41a   :  { %v1145_v14 = vadd.f32 %v1083_v9, %v2102_v3  ;;  %v1578_v27 = vadd.f32 %v1577_v13, %v1576_v8  ;;  %1708 = vmatprep.mubr.f32.mxu0 %v1201_v10  ;;  %v1186_v16 = vadd.f32 %v2277_v35, %v1165_v32 }
 0x41b   :  { %v1579_v18 = vpop.f32.mrf.mxu0 }
 0x41c   :  { %v1088_v63 = vadd.f32 %v1578_v27, %v2265_v30  ;;  %v1202_v25 = vmax.f32 %v1186_v16, 0.0  ;;  %v1166_v12 = vmul.f32 %v2271_v51, %v1145_v14 }
 0x41d   :  { %v1580_v20 = vpop.f32.mrf.mxu0 }
 0x41e   :  { %v1146_v29 = vadd.f32 %v1088_v63, %v2108_v7  ;;  %v1581_v28 = vadd.f32 %v1580_v20, %v1579_v18  ;;  %1709 = vmatmul.mubr.f32.gmra.mxu0 %v1202_v25  ;;  %v1187_v36 = vadd.f32 %v2277_v35, %v1166_v12 }
 0x41f   :  { %v1582_v38 = vpop.f32.mrf.mxu0 }
 0x420   :  { %v1093_v3 = vadd.f32 %v1581_v28, %v2265_v30  ;;  %v1203_v26 = vmax.f32 %v1187_v36, 0.0  ;;  %v1167_v24 = vmul.f32 %v2271_v51, %v1146_v29 }
 0x421   :  { %v1583_v31 = vpop.f32.mrf.mxu0 }
 0x422   :  { %v1147_v44 = vadd.f32 %v1093_v3, %v2114_v11  ;;  %v1584_v47 = vadd.f32 %v1583_v31, %v1582_v38  ;;  %1711 = vmatprep.mubr.f32.mxu0 %v1203_v26  ;;  %v1188_v48 = vadd.f32 %v2277_v35, %v1167_v24 }
 0x423   :  { %v1585_v33 = vpop.f32.mrf.mxu0 }
 0x424   :  { %v1098_v7 = vadd.f32 %v1584_v47, %v2265_v30  ;;  %v1204_v53 = vmax.f32 %v1188_v48, 0.0  ;;  %v1168_v54 = vmul.f32 %v2271_v51, %v1147_v44 }
 0x425   :  { %v1586_v56 = vpop.f32.mrf.mxu0 }
 0x426   :  { %v1148_v58 = vadd.f32 %v1098_v7, %v2120_v15  ;;  %v1587_v59 = vadd.f32 %v1586_v56, %v1585_v33  ;;  %1712 = vmatmul.mubr.f32.gmra.mxu0 %v1204_v53  ;;  %v1189_v37 = vadd.f32 %v2277_v35, %v1168_v54 }
 0x427   :  { %v1588_v60 = vpop.f32.mrf.mxu0 }
 0x428   :  { %v1169_v11 = vmul.f32 %v2271_v51, %v1148_v58  ;;  %v1103_v61 = vadd.f32 %v1587_v59, %v2265_v30  ;;  %v1205_v34 = vmax.f32 %v1189_v37, 0.0 }
 0x429   :  { %v1589_v39 = vpop.f32.mrf.mxu0 }
 0x42a   :  { %v1190_v50 = vadd.f32 %v2277_v35, %v1169_v11  ;;  %v1149_v19 = vadd.f32 %v1103_v61, %v2126_v22  ;;  %v1590_v0 = vadd.f32 %v1589_v39, %v1588_v60  ;;  %1714 = vmatprep.mubr.f32.mxu1 %v1205_v34 }
 0x42b   :  { %v1591_v1 = vpop.f32.mrf.mxu0 }
 0x42c   :  { %v1206_v41 = vmax.f32 %v1190_v50, 0.0  ;;  %v1108_v15 = vadd.f32 %v1590_v0, %v2265_v30  ;;  %v1170_v21 = vmul.f32 %v2271_v51, %v1149_v19 }
 0x42d   :  { %v1592_v4 = vpop.f32.mrf.mxu0 }
 0x42e   :  { %v1150_v5 = vadd.f32 %v1108_v15, %v2132_v42  ;;  %v1593_v6 = vadd.f32 %v1592_v4, %v1591_v1  ;;  %1715 = vmatmul.mubr.f32.vlgmr.msra.gmra.mxu1 %v1206_v41  ;;  %v1191_v57 = vadd.f32 %v2277_v35, %v1170_v21 }
 0x42f   :  { %v1594_v45 = vpop.f32.mrf.mxu0 }
 0x430   :  { %v1113_v52 = vadd.f32 %v1593_v6, %v2265_v30  ;;  %v1207_v46 = vmax.f32 %v1191_v57, 0.0  ;;  %v1171_v22 = vmul.f32 %v2271_v51, %v1150_v5 }
 0x431   :  { %v1595_v40 = vpop.f32.mrf.mxu0 }
 0x432   :  { %v1151_v23 = vadd.f32 %v1113_v52, %v2138_v49  ;;  %v1596_v8 = vadd.f32 %v1595_v40, %v1594_v45  ;;  %1717 = vmatprep.mubr.f32.mxu1 %v1207_v46  ;;  %v1192_v9 = vadd.f32 %v2277_v35, %v1171_v22 }
 0x433   :  { %v1597_v10 = vpop.f32.mrf.mxu0 }
 0x434   :  { %v1118_v42 = vadd.f32 %v1596_v8, %v2265_v30  ;;  %v1208_v32 = vmax.f32 %v1192_v9, 0.0  ;;  %v1172_v13 = vmul.f32 %v2271_v51, %v1151_v23 }
 0x435   :  { %v1598_v14 = vpop.f32.mrf.mxu0 }
 0x436   :  { %v1152_v27 = vadd.f32 %v1118_v42, %v2144_v55  ;;  %v1599_v16 = vadd.f32 %v1598_v14, %v1597_v10  ;;  %1718 = vmatmul.mubr.f32.gmra.mxu1 %v1208_v32  ;;  %v1193_v18 = vadd.f32 %v2277_v35, %v1172_v13 }
 0x437   :  { %v1600_v63 = vpop.f32.mrf.mxu0 }
 0x438   :  { %v1123_v49 = vadd.f32 %v1599_v16, %v2265_v30  ;;  %v1209_v25 = vmax.f32 %v1193_v18, 0.0  ;;  %v1173_v12 = vmul.f32 %v2271_v51, %v1152_v27 }
 0x439   :  { %v1601_v20 = vpop.f32.mrf.mxu0 }
 0x43a   :  { %v1153_v29 = vadd.f32 %v1123_v49, %v2150_v17  ;;  %v1602_v28 = vadd.f32 %v1601_v20, %v1600_v63  ;;  %1720 = vmatprep.mubr.f32.mxu1 %v1209_v25  ;;  %v1194_v36 = vadd.f32 %v2277_v35, %v1173_v12 }
 0x43b   :  { %v1603_v38 = vpop.f32.mrf.mxu0 }
 0x43c   :  { %v1128_v55 = vadd.f32 %v1602_v28, %v2265_v30  ;;  %v1210_v3 = vmax.f32 %v1194_v36, 0.0  ;;  %v1174_v26 = vmul.f32 %v2271_v51, %v1153_v29 }
 0x43d   :  { %v1604_v24 = vpop.f32.mrf.mxu0 }
 0x43e   :  { %v1154_v31 = vadd.f32 %v1128_v55, %v2156_v62  ;;  %v1605_v44 = vadd.f32 %v1604_v24, %v1603_v38  ;;  %1721 = vmatmul.mubr.f32.gmra.mxu1 %v1210_v3  ;;  %v1195_v47 = vadd.f32 %v2277_v35, %v1174_v26 }
 0x43f   :  { %v1606_v48 = vpop.f32.mrf.mxu0 }
 0x440   :  { %v1133_v17 = vadd.f32 %v1605_v44, %v2265_v30  ;;  %v1211_v33 = vmax.f32 %v1195_v47, 0.0  ;;  %v1175_v7 = vmul.f32 %v2271_v51, %v1154_v31 }
 0x441   :  { %v1607_v53 = vpop.f32.mrf.mxu0 }
 0x442   :  { %v1155_v54 = vadd.f32 %v1133_v17, %v2162_v2  ;;  %v1608_v56 = vadd.f32 %v1607_v53, %v1606_v48  ;;  %1723 = vmatprep.mubr.f32.mxu1 %v1211_v33  ;;  %v1196_v58 = vadd.f32 %v2277_v35, %v1175_v7 }
 0x444   :  { %v1138_v59 = vadd.f32 %v1608_v56, %v2265_v30  ;;  %v1212_v62 = vmax.f32 %v1196_v58, 0.0  ;;  %v1176_v37 = vmul.f32 %v2271_v51, %v1155_v54  ;;  %v1428_v30 = vld [vmem:[%s2417_s9] ss:$0 sm:$0xff] }
 0x446   :  { %v1156_v60 = vadd.f32 %v1138_v59, %v2168_v43  ;;  %1724 = vmatmul.mubr.f32.gmra.mxu1 %v1212_v62  ;;  %v1197_v11 = vadd.f32 %v2277_v35, %v1176_v37 }
 0x448   :  { %v1213_v61 = vmax.f32 %v1197_v11, 0.0  ;;  %v1177_v34 = vmul.f32 %v2271_v51, %v1156_v60 }
 0x44a   :  { %1726 = vmatprep.mubr.f32.mxu1 %v1213_v61  ;;  %v1198_v2 = vadd.f32 %v2277_v35, %v1177_v34 }
 0x44c   :  { %v1214_v39 = vmax.f32 %v1198_v2, 0.0 }
 0x44e   :  { %1727 = vmatmul.mubr.f32.gmra.mxu1 %v1214_v39 }
 0x4d6   :  { %v1707_v50 = vpop.f32.mrf.mxu0 }
 0x4d7   :  { %v1310_v19 = vadd.f32 %v1707_v50, %v1428_v30 }
 0x4d8   :  { %v1304_v0 = vpop.f32.mrf.mxu0 }
 0x4d9   :  { %1385 = vst.msk [vmem:[%s2418_s10 + $0x8] sm:$0xff] %vm1383_vm1, %v1310_v19  ;;  %v1305_v43 = vadd.f32 %v1428_v30, %v1304_v0 }
 0x4db   :  { %1384 = vst.msk [vmem:[%s2418_s10] sm:$0xff] %vm1383_vm1, %v1305_v43 }
 0x4de   :  { %v1710_v51 = vpop.f32.mrf.mxu0 }
 0x4df   :  { %v1320_v35 = vadd.f32 %v1710_v51, %v1428_v30 }
 0x4e0   :  { %v1314_v1 = vpop.f32.mrf.mxu0 }
 0x4e1   :  { %1387 = vst.msk [vmem:[%s2418_s10 + $0x18] sm:$0xff] %vm1383_vm1, %v1320_v35  ;;  %v1315_v41 = vadd.f32 %v1428_v30, %v1314_v1 }
 0x4e3   :  { %1386 = vst.msk [vmem:[%s2418_s10 + $0x10] sm:$0xff] %vm1383_vm1, %v1315_v41 }
 0x4e6   :  { %v1713_v15 = vpop.f32.mrf.mxu0 }
 0x4e7   :  { %v1330_v21 = vadd.f32 %v1713_v15, %v1428_v30 }
 0x4e8   :  { %v1324_v4 = vpop.f32.mrf.mxu0 }
 0x4e9   :  { %1389 = vst.msk [vmem:[%s2418_s10 + $0x28] sm:$0xff] %vm1383_vm1, %v1330_v21  ;;  %v1325_v5 = vadd.f32 %v1428_v30, %v1324_v4 }
 0x4eb   :  { %1388 = vst.msk [vmem:[%s2418_s10 + $0x20] sm:$0xff] %vm1383_vm1, %v1325_v5 }
 0x4ee   :  { %v1716_v6 = vpop.f32.mrf.mxu1 }
 0x4ef   :  { %v1340_v57 = vadd.f32 %v1716_v6, %v1428_v30 }
 0x4f0   :  { %v1334_v45 = vpop.f32.mrf.mxu1 }
 0x4f1   :  { %1391 = vst.msk [vmem:[%s2418_s10 + $0x38] sm:$0xff] %vm1383_vm1, %v1340_v57  ;;  %v1335_v52 = vadd.f32 %v1428_v30, %v1334_v45 }
 0x4f3   :  { %1390 = vst.msk [vmem:[%s2418_s10 + $0x30] sm:$0xff] %vm1383_vm1, %v1335_v52 }
 0x4f6   :  { %v1719_v46 = vpop.f32.mrf.mxu1 }
 0x4f7   :  { %v1350_v22 = vadd.f32 %v1719_v46, %v1428_v30 }
 0x4f8   :  { %v1344_v40 = vpop.f32.mrf.mxu1 }
 0x4f9   :  { %1393 = vst.msk [vmem:[%s2418_s10 + $0x48] sm:$0xff] %vm1383_vm1, %v1350_v22  ;;  %v1345_v23 = vadd.f32 %v1428_v30, %v1344_v40 }
 0x4fb   :  { %1392 = vst.msk [vmem:[%s2418_s10 + $0x40] sm:$0xff] %vm1383_vm1, %v1345_v23 }
 0x4fe   :  { %v1722_v8 = vpop.f32.mrf.mxu1 }
 0x4ff   :  { %v1360_v9 = vadd.f32 %v1722_v8, %v1428_v30 }
 0x500   :  { %v1354_v10 = vpop.f32.mrf.mxu1 }
 0x501   :  { %1395 = vst.msk [vmem:[%s2418_s10 + $0x58] sm:$0xff] %vm1383_vm1, %v1360_v9  ;;  %v1355_v42 = vadd.f32 %v1428_v30, %v1354_v10 }
 0x503   :  { %1394 = vst.msk [vmem:[%s2418_s10 + $0x50] sm:$0xff] %vm1383_vm1, %v1355_v42 }
 0x506   :  { %v1725_v32 = vpop.f32.mrf.mxu1 }
 0x507   :  { %v1370_v13 = vadd.f32 %v1725_v32, %v1428_v30 }
 0x508   :  { %v1364_v14 = vpop.f32.mrf.mxu1 }
 0x509   :  { %1397 = vst.msk [vmem:[%s2418_s10 + $0x68] sm:$0xff] %vm1383_vm1, %v1370_v13  ;;  %v1365_v27 = vadd.f32 %v1428_v30, %v1364_v14 }
 0x50b   :  { %1396 = vst.msk [vmem:[%s2418_s10 + $0x60] sm:$0xff] %vm1383_vm1, %v1365_v27 }
 0x50e   :  { %v1728_v16 = vpop.f32.mrf.mxu1 }
 0x50f   :  { %v1380_v18 = vadd.f32 %v1728_v16, %v1428_v30 }
 0x510   :  { %v1374_v63 = vpop.f32.mrf.mxu1 }
 0x511   :  { %1399 = vst.msk [vmem:[%s2418_s10 + $0x78] sm:$0xff] %vm1383_vm1, %v1380_v18  ;;  %v1375_v49 = vadd.f32 %v1428_v30, %v1374_v63 }
 0x513   :  { %1398 = vst.msk [vmem:[%s2418_s10 + $0x70] sm:$0xff] %vm1383_vm1, %v1375_v49 }
 0x514   :  { %1404 = vsyncpa [#allocation3], 1 }
 0x515   :  { %1405 = vsyncpa [#allocation5], 1 }

</bundles_post_ra>
